<compile_context>
chip_gen: v7x
topology: tpu7x:2x2x1
jax: 0.10.0
libtpu: 0.0.40
codegen_flags: <defaults>
</compile_context>

<pallas_src>
import functools

import jax
import jax.numpy as jnp
from jax.experimental import pallas as pl
from jax.experimental.pallas import tpu as pltpu

HIDDEN = 256
IN_FEATURES = 2
CHUNK = 8          # hidden rows per inner step == one sublane group


def _round_up(x, m):
    return ((x + m - 1) // m) * m


def actor_critic_kernel(xT_ref, pp_ref, b2_ref, out_ref, *, lsub):
    """One batch block of the critic forward, batch on the lane axis.

    xT_ref : (2, TM)        states, transposed (lane-dense batch)
    pp_ref : (256, 8)       packed params: [:,0]=w1[:,0], [:,1]=w1[:,1],
                            [:,2]=b1, [:,3]=w2 row, [:,4:8]=0
    b2_ref : (1, 1)  SMEM   value_layer.bias (scalar)
    out_ref: (1, TM)        state values, lane-dense
    """
    tm = out_ref.shape[1]
    n_lane_tiles = tm // lsub
    n_chunks = HIDDEN // CHUNK
    b2 = b2_ref[0, 0]

    @pl.loop(0, n_lane_tiles)
    def _(t):
        off = pl.multiple_of(t * lsub, 128)
        xblk = xT_ref[:, pl.ds(off, lsub)]                        # (2, lsub)
        # Hoisted sublane broadcasts: reused by every hidden chunk below
        # (JAX does not CSE broadcast_in_dim, so do it exactly once).
        x0 = jnp.broadcast_to(xblk[0:1, :], (CHUNK, lsub))        # (8, lsub)
        x1 = jnp.broadcast_to(xblk[1:2, :], (CHUNK, lsub))

        acc = jnp.zeros((CHUNK, lsub), jnp.float32)
        for c in range(n_chunks):                                 # static unroll
            p = pp_ref[c * CHUNK:(c + 1) * CHUNK, :]              # (8, 8)
            # Layer 1 on the VPU: two broadcast FMAs + bias, then ReLU.
            z = p[:, 0:1] * x0 + p[:, 1:2] * x1 + p[:, 2:3]
            z = jnp.maximum(z, 0.0)
            # Layer 2 partial: scale by the w2 chunk, accumulate per sublane.
            acc = acc + z * p[:, 3:4]
        # One 8-way cross-sublane reduce (XLU) per lane sub-tile.
        v = jnp.sum(acc, axis=0, keepdims=True) + b2              # (1, lsub)
        out_ref[:, pl.ds(off, lsub)] = v


def actor_critic_forward(state, w1, b1, w2, b2, *, tm=8192):
    """state: [B, 2] -> state_value: [B, 1] f32 (critic head).

    Params are in PyTorch nn.Linear layout:
      w1: [256, 2], b1: [256], w2: [1, 256], b2: [1].
    """
    B = state.shape[0]
    # Lane tile: big enough to amortize ~0.35us/step, shrunk for tiny batches,
    # and capped so large batches still get >= 2 grid steps (v7x dual-TC).
    tm = min(tm, _round_up(B, 128))
    if B > 128:
        tm = min(tm, _round_up(pl.cdiv(B, 2), 128))
    tm = max(tm, 128)
    # In-kernel lane sub-tile: largest of {512, 256, 128} that divides tm.
    lsub = 512 if tm % 512 == 0 else (256 if tm % 256 == 0 else 128)
    b_pad = _round_up(B, tm)

    # Pad batch to a tile multiple and present it transposed (batch on lanes).
    x_pad = jnp.zeros((b_pad, IN_FEATURES), jnp.float32).at[:B].set(
        state.astype(jnp.float32))
    xT = x_pad.T                                                  # (2, b_pad)

    # One packed parameter tile (single resident DMA instead of three).
    pp = jnp.concatenate(
        [w1.astype(jnp.float32),                                  # (256, 2)
         b1.reshape(HIDDEN, 1).astype(jnp.float32),               # (256, 1)
         w2.reshape(1, HIDDEN).T.astype(jnp.float32),             # (256, 1)
         jnp.zeros((HIDDEN, 4), jnp.float32)], axis=1)            # -> (256, 8)
    b2s = jnp.reshape(b2, (1, 1)).astype(jnp.float32)             # SMEM scalar

    grid = (b_pad // tm,)
    kernel = functools.partial(actor_critic_kernel, lsub=lsub)
    out = pl.pallas_call(
        kernel,
        out_shape=jax.ShapeDtypeStruct((1, b_pad), jnp.float32),
        grid=grid,
        in_specs=[
            # Batch tiles stream through VMEM (auto double-buffered).
            pl.BlockSpec((IN_FEATURES, tm), lambda i: (0, i)),
            # Packed params: constant block index -> DMA'd once, resident.
            pl.BlockSpec((HIDDEN, 8), lambda i: (0, 0)),
            # Scalar bias in SMEM (no padded VMEM tile for a scalar).
            pl.BlockSpec(memory_space=pltpu.MemorySpace.SMEM),
        ],
        # Lane-dense output slab; unmasked stores.
        out_specs=pl.BlockSpec((1, tm), lambda i: (0, i)),
        compiler_params=pltpu.CompilerParams(
            dimension_semantics=("parallel",)),   # dual-TC sharding on v7x
    )(xT, pp, b2s)

    # Padded lanes hold relu(b1)@w2 + b2 garbage -> slice them off here.
    return out[0, :B].reshape(B, 1)


def init_params(key):
    """nn.Linear default init (U(-1/sqrt(fan_in), 1/sqrt(fan_in))), PyTorch layout."""
    k1, k2, k3, k4 = jax.random.split(key, 4)
    bound1 = 1.0 / jnp.sqrt(IN_FEATURES)
    bound2 = 1.0 / jnp.sqrt(HIDDEN)
    w1 = jax.random.uniform(k1, (HIDDEN, IN_FEATURES), jnp.float32, -bound1, bound1)
    b1 = jax.random.uniform(k2, (HIDDEN,), jnp.float32, -bound1, bound1)
    w2 = jax.random.uniform(k3, (1, HIDDEN), jnp.float32, -bound2, bound2)
    b2 = jax.random.uniform(k4, (1,), jnp.float32, -bound2, bound2)
    return w1, b1, w2, b2


if __name__ == "__main__":
    key = jax.random.PRNGKey(0)
    kp, kx = jax.random.split(key)
    w1, b1, w2, b2 = init_params(kp)

    # Small batch of 2-dim states (as in the A2C env loop).
    B = 8
    state = jax.random.normal(kx, (B, IN_FEATURES), jnp.float32)

    state_value = actor_critic_forward(state, w1, b1, w2, b2)
    jax.block_until_ready(state_value)

    # Pure-JAX reference (PyTorch layout: x @ W.T + b).
    ref = jnp.maximum(state @ w1.T + b1, 0.0) @ w2.T + b2
    assert state_value.shape == (B, 1), state_value.shape
    assert jnp.allclose(state_value, ref, atol=1e-5, rtol=1e-5), (
        float(jnp.max(jnp.abs(state_value - ref))))

    # TODO(synk): state_values/rewards list bookkeeping, calculateLoss
    # (discounted returns + smooth_l1) and clearMemory are host-side training
    # utilities, not part of the tensor forward pass, so they are not kernels.
    # The spec's module has no actor head, so only the critic path is fused.

    print("KERNEL_OK")
</pallas_src>

<mosaic_0001>
module attributes {stable_mosaic.version = 11 : i64} {
  func.func @actor_critic_kernel(%arg0: i32, %arg1: memref<2x128xf32, #tpu.memory_space<vmem>>, %arg2: memref<256x8xf32, #tpu.memory_space<vmem>>, %arg3: memref<1x1xf32, #tpu.memory_space<smem>>, %arg4: memref<1x128xf32, #tpu.memory_space<vmem>>) attributes {dimension_semantics = [#tpu.dimension_semantics<parallel>], iteration_bounds = array<i64: 1>, scalar_prefetch = 0 : i64, scratch_operands = 0 : i64, tpu.core_type = #tpu.core_type<tc>, window_params = [{transform_indices = @transform_0, window_bounds = array<i64: 2, 128>}, {pipeline_mode = #tpu.pipeline_mode<synchronous>, transform_indices = @transform_1, window_bounds = array<i64: 256, 8>}, {transform_indices = @transform_2, window_bounds = array<i64: 1, 1>}, {transform_indices = @transform_3, window_bounds = array<i64: 1, 128>}]} {
    %c0 = arith.constant 0 : index
    %c0_0 = arith.constant 0 : index
    %0 = memref.load %arg3[%c0, %c0_0] : memref<1x1xf32, #tpu.memory_space<smem>>
    %c0_i32 = arith.constant 0 : i32
    %c1_i32 = arith.constant 1 : i32
    %1 = arith.muli %c0_i32, %c1_i32 : i32
    %c0_i32_1 = arith.constant 0 : i32
    %2 = arith.addi %c0_i32_1, %1 : i32
    %c128_i32 = arith.constant 128 : i32
    %3 = arith.muli %2, %c128_i32 : i32
    %4 = tpu.assume_multiple %3, 128 : i32
    %c0_2 = arith.constant 0 : index
    %5 = arith.index_cast %4 : i32 to index
    %6 = vector.load %arg1[%c0_2, %5] : memref<2x128xf32, #tpu.memory_space<vmem>>, vector<2x128xf32>
    %7 = vector.extract_strided_slice %6 {offsets = [0, 0], sizes = [1, 128], strides = [1, 1]} : vector<2x128xf32> to vector<1x128xf32>
    %8 = vector.shape_cast %7 : vector<1x128xf32> to vector<1x128xf32>
    %9 = vector.broadcast %8 : vector<1x128xf32> to vector<8x128xf32>
    %10 = vector.extract_strided_slice %6 {offsets = [1, 0], sizes = [1, 128], strides = [1, 1]} : vector<2x128xf32> to vector<1x128xf32>
    %11 = vector.shape_cast %10 : vector<1x128xf32> to vector<1x128xf32>
    %12 = vector.broadcast %11 : vector<1x128xf32> to vector<8x128xf32>
    %cst = arith.constant 0.000000e+00 : f32
    %13 = vector.broadcast %cst : f32 to vector<8x128xf32>
    %c0_3 = arith.constant 0 : index
    %c0_4 = arith.constant 0 : index
    %14 = vector.load %arg2[%c0_3, %c0_4] : memref<256x8xf32, #tpu.memory_space<vmem>>, vector<8x8xf32>
    %15 = vector.extract_strided_slice %14 {offsets = [0, 0], sizes = [8, 1], strides = [1, 1]} : vector<8x8xf32> to vector<8x1xf32>
    %16 = vector.broadcast %15 : vector<8x1xf32> to vector<8x128xf32>
    %17 = arith.mulf %16, %9 : vector<8x128xf32>
    %18 = vector.extract_strided_slice %14 {offsets = [0, 1], sizes = [8, 1], strides = [1, 1]} : vector<8x8xf32> to vector<8x1xf32>
    %19 = vector.broadcast %18 : vector<8x1xf32> to vector<8x128xf32>
    %20 = arith.mulf %19, %12 : vector<8x128xf32>
    %21 = arith.addf %17, %20 : vector<8x128xf32>
    %22 = vector.extract_strided_slice %14 {offsets = [0, 2], sizes = [8, 1], strides = [1, 1]} : vector<8x8xf32> to vector<8x1xf32>
    %23 = vector.broadcast %22 : vector<8x1xf32> to vector<8x128xf32>
    %24 = arith.addf %21, %23 : vector<8x128xf32>
    %cst_5 = arith.constant 0.000000e+00 : f32
    %25 = vector.broadcast %cst_5 : f32 to vector<8x128xf32>
    %26 = arith.maximumf %24, %25 : vector<8x128xf32>
    %27 = vector.extract_strided_slice %14 {offsets = [0, 3], sizes = [8, 1], strides = [1, 1]} : vector<8x8xf32> to vector<8x1xf32>
    %28 = vector.broadcast %27 : vector<8x1xf32> to vector<8x128xf32>
    %29 = arith.mulf %26, %28 : vector<8x128xf32>
    %30 = arith.addf %13, %29 : vector<8x128xf32>
    %c8 = arith.constant 8 : index
    %c0_6 = arith.constant 0 : index
    %31 = vector.load %arg2[%c8, %c0_6] : memref<256x8xf32, #tpu.memory_space<vmem>>, vector<8x8xf32>
    %32 = vector.extract_strided_slice %31 {offsets = [0, 0], sizes = [8, 1], strides = [1, 1]} : vector<8x8xf32> to vector<8x1xf32>
    %33 = vector.broadcast %32 : vector<8x1xf32> to vector<8x128xf32>
    %34 = arith.mulf %33, %9 : vector<8x128xf32>
    %35 = vector.extract_strided_slice %31 {offsets = [0, 1], sizes = [8, 1], strides = [1, 1]} : vector<8x8xf32> to vector<8x1xf32>
    %36 = vector.broadcast %35 : vector<8x1xf32> to vector<8x128xf32>
    %37 = arith.mulf %36, %12 : vector<8x128xf32>
    %38 = arith.addf %34, %37 : vector<8x128xf32>
    %39 = vector.extract_strided_slice %31 {offsets = [0, 2], sizes = [8, 1], strides = [1, 1]} : vector<8x8xf32> to vector<8x1xf32>
    %40 = vector.broadcast %39 : vector<8x1xf32> to vector<8x128xf32>
    %41 = arith.addf %38, %40 : vector<8x128xf32>
    %cst_7 = arith.constant 0.000000e+00 : f32
    %42 = vector.broadcast %cst_7 : f32 to vector<8x128xf32>
    %43 = arith.maximumf %41, %42 : vector<8x128xf32>
    %44 = vector.extract_strided_slice %31 {offsets = [0, 3], sizes = [8, 1], strides = [1, 1]} : vector<8x8xf32> to vector<8x1xf32>
    %45 = vector.broadcast %44 : vector<8x1xf32> to vector<8x128xf32>
    %46 = arith.mulf %43, %45 : vector<8x128xf32>
    %47 = arith.addf %30, %46 : vector<8x128xf32>
    %c16 = arith.constant 16 : index
    %c0_8 = arith.constant 0 : index
    %48 = vector.load %arg2[%c16, %c0_8] : memref<256x8xf32, #tpu.memory_space<vmem>>, vector<8x8xf32>
    %49 = vector.extract_strided_slice %48 {offsets = [0, 0], sizes = [8, 1], strides = [1, 1]} : vector<8x8xf32> to vector<8x1xf32>
    %50 = vector.broadcast %49 : vector<8x1xf32> to vector<8x128xf32>
    %51 = arith.mulf %50, %9 : vector<8x128xf32>
    %52 = vector.extract_strided_slice %48 {offsets = [0, 1], sizes = [8, 1], strides = [1, 1]} : vector<8x8xf32> to vector<8x1xf32>
    %53 = vector.broadcast %52 : vector<8x1xf32> to vector<8x128xf32>
    %54 = arith.mulf %53, %12 : vector<8x128xf32>
    %55 = arith.addf %51, %54 : vector<8x128xf32>
    %56 = vector.extract_strided_slice %48 {offsets = [0, 2], sizes = [8, 1], strides = [1, 1]} : vector<8x8xf32> to vector<8x1xf32>
    %57 = vector.broadcast %56 : vector<8x1xf32> to vector<8x128xf32>
    %58 = arith.addf %55, %57 : vector<8x128xf32>
    %cst_9 = arith.constant 0.000000e+00 : f32
    %59 = vector.broadcast %cst_9 : f32 to vector<8x128xf32>
    %60 = arith.maximumf %58, %59 : vector<8x128xf32>
    %61 = vector.extract_strided_slice %48 {offsets = [0, 3], sizes = [8, 1], strides = [1, 1]} : vector<8x8xf32> to vector<8x1xf32>
    %62 = vector.broadcast %61 : vector<8x1xf32> to vector<8x128xf32>
    %63 = arith.mulf %60, %62 : vector<8x128xf32>
    %64 = arith.addf %47, %63 : vector<8x128xf32>
    %c24 = arith.constant 24 : index
    %c0_10 = arith.constant 0 : index
    %65 = vector.load %arg2[%c24, %c0_10] : memref<256x8xf32, #tpu.memory_space<vmem>>, vector<8x8xf32>
    %66 = vector.extract_strided_slice %65 {offsets = [0, 0], sizes = [8, 1], strides = [1, 1]} : vector<8x8xf32> to vector<8x1xf32>
    %67 = vector.broadcast %66 : vector<8x1xf32> to vector<8x128xf32>
    %68 = arith.mulf %67, %9 : vector<8x128xf32>
    %69 = vector.extract_strided_slice %65 {offsets = [0, 1], sizes = [8, 1], strides = [1, 1]} : vector<8x8xf32> to vector<8x1xf32>
    %70 = vector.broadcast %69 : vector<8x1xf32> to vector<8x128xf32>
    %71 = arith.mulf %70, %12 : vector<8x128xf32>
    %72 = arith.addf %68, %71 : vector<8x128xf32>
    %73 = vector.extract_strided_slice %65 {offsets = [0, 2], sizes = [8, 1], strides = [1, 1]} : vector<8x8xf32> to vector<8x1xf32>
    %74 = vector.broadcast %73 : vector<8x1xf32> to vector<8x128xf32>
    %75 = arith.addf %72, %74 : vector<8x128xf32>
    %cst_11 = arith.constant 0.000000e+00 : f32
    %76 = vector.broadcast %cst_11 : f32 to vector<8x128xf32>
    %77 = arith.maximumf %75, %76 : vector<8x128xf32>
    %78 = vector.extract_strided_slice %65 {offsets = [0, 3], sizes = [8, 1], strides = [1, 1]} : vector<8x8xf32> to vector<8x1xf32>
    %79 = vector.broadcast %78 : vector<8x1xf32> to vector<8x128xf32>
    %80 = arith.mulf %77, %79 : vector<8x128xf32>
    %81 = arith.addf %64, %80 : vector<8x128xf32>
    %c32 = arith.constant 32 : index
    %c0_12 = arith.constant 0 : index
    %82 = vector.load %arg2[%c32, %c0_12] : memref<256x8xf32, #tpu.memory_space<vmem>>, vector<8x8xf32>
    %83 = vector.extract_strided_slice %82 {offsets = [0, 0], sizes = [8, 1], strides = [1, 1]} : vector<8x8xf32> to vector<8x1xf32>
    %84 = vector.broadcast %83 : vector<8x1xf32> to vector<8x128xf32>
    %85 = arith.mulf %84, %9 : vector<8x128xf32>
    %86 = vector.extract_strided_slice %82 {offsets = [0, 1], sizes = [8, 1], strides = [1, 1]} : vector<8x8xf32> to vector<8x1xf32>
    %87 = vector.broadcast %86 : vector<8x1xf32> to vector<8x128xf32>
    %88 = arith.mulf %87, %12 : vector<8x128xf32>
    %89 = arith.addf %85, %88 : vector<8x128xf32>
    %90 = vector.extract_strided_slice %82 {offsets = [0, 2], sizes = [8, 1], strides = [1, 1]} : vector<8x8xf32> to vector<8x1xf32>
    %91 = vector.broadcast %90 : vector<8x1xf32> to vector<8x128xf32>
    %92 = arith.addf %89, %91 : vector<8x128xf32>
    %cst_13 = arith.constant 0.000000e+00 : f32
    %93 = vector.broadcast %cst_13 : f32 to vector<8x128xf32>
    %94 = arith.maximumf %92, %93 : vector<8x128xf32>
    %95 = vector.extract_strided_slice %82 {offsets = [0, 3], sizes = [8, 1], strides = [1, 1]} : vector<8x8xf32> to vector<8x1xf32>
    %96 = vector.broadcast %95 : vector<8x1xf32> to vector<8x128xf32>
    %97 = arith.mulf %94, %96 : vector<8x128xf32>
    %98 = arith.addf %81, %97 : vector<8x128xf32>
    %c40 = arith.constant 40 : index
    %c0_14 = arith.constant 0 : index
    %99 = vector.load %arg2[%c40, %c0_14] : memref<256x8xf32, #tpu.memory_space<vmem>>, vector<8x8xf32>
    %100 = vector.extract_strided_slice %99 {offsets = [0, 0], sizes = [8, 1], strides = [1, 1]} : vector<8x8xf32> to vector<8x1xf32>
    %101 = vector.broadcast %100 : vector<8x1xf32> to vector<8x128xf32>
    %102 = arith.mulf %101, %9 : vector<8x128xf32>
    %103 = vector.extract_strided_slice %99 {offsets = [0, 1], sizes = [8, 1], strides = [1, 1]} : vector<8x8xf32> to vector<8x1xf32>
    %104 = vector.broadcast %103 : vector<8x1xf32> to vector<8x128xf32>
    %105 = arith.mulf %104, %12 : vector<8x128xf32>
    %106 = arith.addf %102, %105 : vector<8x128xf32>
    %107 = vector.extract_strided_slice %99 {offsets = [0, 2], sizes = [8, 1], strides = [1, 1]} : vector<8x8xf32> to vector<8x1xf32>
    %108 = vector.broadcast %107 : vector<8x1xf32> to vector<8x128xf32>
    %109 = arith.addf %106, %108 : vector<8x128xf32>
    %cst_15 = arith.constant 0.000000e+00 : f32
    %110 = vector.broadcast %cst_15 : f32 to vector<8x128xf32>
    %111 = arith.maximumf %109, %110 : vector<8x128xf32>
    %112 = vector.extract_strided_slice %99 {offsets = [0, 3], sizes = [8, 1], strides = [1, 1]} : vector<8x8xf32> to vector<8x1xf32>
    %113 = vector.broadcast %112 : vector<8x1xf32> to vector<8x128xf32>
    %114 = arith.mulf %111, %113 : vector<8x128xf32>
    %115 = arith.addf %98, %114 : vector<8x128xf32>
    %c48 = arith.constant 48 : index
    %c0_16 = arith.constant 0 : index
    %116 = vector.load %arg2[%c48, %c0_16] : memref<256x8xf32, #tpu.memory_space<vmem>>, vector<8x8xf32>
    %117 = vector.extract_strided_slice %116 {offsets = [0, 0], sizes = [8, 1], strides = [1, 1]} : vector<8x8xf32> to vector<8x1xf32>
    %118 = vector.broadcast %117 : vector<8x1xf32> to vector<8x128xf32>
    %119 = arith.mulf %118, %9 : vector<8x128xf32>
    %120 = vector.extract_strided_slice %116 {offsets = [0, 1], sizes = [8, 1], strides = [1, 1]} : vector<8x8xf32> to vector<8x1xf32>
    %121 = vector.broadcast %120 : vector<8x1xf32> to vector<8x128xf32>
    %122 = arith.mulf %121, %12 : vector<8x128xf32>
    %123 = arith.addf %119, %122 : vector<8x128xf32>
    %124 = vector.extract_strided_slice %116 {offsets = [0, 2], sizes = [8, 1], strides = [1, 1]} : vector<8x8xf32> to vector<8x1xf32>
    %125 = vector.broadcast %124 : vector<8x1xf32> to vector<8x128xf32>
    %126 = arith.addf %123, %125 : vector<8x128xf32>
    %cst_17 = arith.constant 0.000000e+00 : f32
    %127 = vector.broadcast %cst_17 : f32 to vector<8x128xf32>
    %128 = arith.maximumf %126, %127 : vector<8x128xf32>
    %129 = vector.extract_strided_slice %116 {offsets = [0, 3], sizes = [8, 1], strides = [1, 1]} : vector<8x8xf32> to vector<8x1xf32>
    %130 = vector.broadcast %129 : vector<8x1xf32> to vector<8x128xf32>
    %131 = arith.mulf %128, %130 : vector<8x128xf32>
    %132 = arith.addf %115, %131 : vector<8x128xf32>
    %c56 = arith.constant 56 : index
    %c0_18 = arith.constant 0 : index
    %133 = vector.load %arg2[%c56, %c0_18] : memref<256x8xf32, #tpu.memory_space<vmem>>, vector<8x8xf32>
    %134 = vector.extract_strided_slice %133 {offsets = [0, 0], sizes = [8, 1], strides = [1, 1]} : vector<8x8xf32> to vector<8x1xf32>
    %135 = vector.broadcast %134 : vector<8x1xf32> to vector<8x128xf32>
    %136 = arith.mulf %135, %9 : vector<8x128xf32>
    %137 = vector.extract_strided_slice %133 {offsets = [0, 1], sizes = [8, 1], strides = [1, 1]} : vector<8x8xf32> to vector<8x1xf32>
    %138 = vector.broadcast %137 : vector<8x1xf32> to vector<8x128xf32>
    %139 = arith.mulf %138, %12 : vector<8x128xf32>
    %140 = arith.addf %136, %139 : vector<8x128xf32>
    %141 = vector.extract_strided_slice %133 {offsets = [0, 2], sizes = [8, 1], strides = [1, 1]} : vector<8x8xf32> to vector<8x1xf32>
    %142 = vector.broadcast %141 : vector<8x1xf32> to vector<8x128xf32>
    %143 = arith.addf %140, %142 : vector<8x128xf32>
    %cst_19 = arith.constant 0.000000e+00 : f32
    %144 = vector.broadcast %cst_19 : f32 to vector<8x128xf32>
    %145 = arith.maximumf %143, %144 : vector<8x128xf32>
    %146 = vector.extract_strided_slice %133 {offsets = [0, 3], sizes = [8, 1], strides = [1, 1]} : vector<8x8xf32> to vector<8x1xf32>
    %147 = vector.broadcast %146 : vector<8x1xf32> to vector<8x128xf32>
    %148 = arith.mulf %145, %147 : vector<8x128xf32>
    %149 = arith.addf %132, %148 : vector<8x128xf32>
    %c64 = arith.constant 64 : index
    %c0_20 = arith.constant 0 : index
    %150 = vector.load %arg2[%c64, %c0_20] : memref<256x8xf32, #tpu.memory_space<vmem>>, vector<8x8xf32>
    %151 = vector.extract_strided_slice %150 {offsets = [0, 0], sizes = [8, 1], strides = [1, 1]} : vector<8x8xf32> to vector<8x1xf32>
    %152 = vector.broadcast %151 : vector<8x1xf32> to vector<8x128xf32>
    %153 = arith.mulf %152, %9 : vector<8x128xf32>
    %154 = vector.extract_strided_slice %150 {offsets = [0, 1], sizes = [8, 1], strides = [1, 1]} : vector<8x8xf32> to vector<8x1xf32>
    %155 = vector.broadcast %154 : vector<8x1xf32> to vector<8x128xf32>
    %156 = arith.mulf %155, %12 : vector<8x128xf32>
    %157 = arith.addf %153, %156 : vector<8x128xf32>
    %158 = vector.extract_strided_slice %150 {offsets = [0, 2], sizes = [8, 1], strides = [1, 1]} : vector<8x8xf32> to vector<8x1xf32>
    %159 = vector.broadcast %158 : vector<8x1xf32> to vector<8x128xf32>
    %160 = arith.addf %157, %159 : vector<8x128xf32>
    %cst_21 = arith.constant 0.000000e+00 : f32
    %161 = vector.broadcast %cst_21 : f32 to vector<8x128xf32>
    %162 = arith.maximumf %160, %161 : vector<8x128xf32>
    %163 = vector.extract_strided_slice %150 {offsets = [0, 3], sizes = [8, 1], strides = [1, 1]} : vector<8x8xf32> to vector<8x1xf32>
    %164 = vector.broadcast %163 : vector<8x1xf32> to vector<8x128xf32>
    %165 = arith.mulf %162, %164 : vector<8x128xf32>
    %166 = arith.addf %149, %165 : vector<8x128xf32>
    %c72 = arith.constant 72 : index
    %c0_22 = arith.constant 0 : index
    %167 = vector.load %arg2[%c72, %c0_22] : memref<256x8xf32, #tpu.memory_space<vmem>>, vector<8x8xf32>
    %168 = vector.extract_strided_slice %167 {offsets = [0, 0], sizes = [8, 1], strides = [1, 1]} : vector<8x8xf32> to vector<8x1xf32>
    %169 = vector.broadcast %168 : vector<8x1xf32> to vector<8x128xf32>
    %170 = arith.mulf %169, %9 : vector<8x128xf32>
    %171 = vector.extract_strided_slice %167 {offsets = [0, 1], sizes = [8, 1], strides = [1, 1]} : vector<8x8xf32> to vector<8x1xf32>
    %172 = vector.broadcast %171 : vector<8x1xf32> to vector<8x128xf32>
    %173 = arith.mulf %172, %12 : vector<8x128xf32>
    %174 = arith.addf %170, %173 : vector<8x128xf32>
    %175 = vector.extract_strided_slice %167 {offsets = [0, 2], sizes = [8, 1], strides = [1, 1]} : vector<8x8xf32> to vector<8x1xf32>
    %176 = vector.broadcast %175 : vector<8x1xf32> to vector<8x128xf32>
    %177 = arith.addf %174, %176 : vector<8x128xf32>
    %cst_23 = arith.constant 0.000000e+00 : f32
    %178 = vector.broadcast %cst_23 : f32 to vector<8x128xf32>
    %179 = arith.maximumf %177, %178 : vector<8x128xf32>
    %180 = vector.extract_strided_slice %167 {offsets = [0, 3], sizes = [8, 1], strides = [1, 1]} : vector<8x8xf32> to vector<8x1xf32>
    %181 = vector.broadcast %180 : vector<8x1xf32> to vector<8x128xf32>
    %182 = arith.mulf %179, %181 : vector<8x128xf32>
    %183 = arith.addf %166, %182 : vector<8x128xf32>
    %c80 = arith.constant 80 : index
    %c0_24 = arith.constant 0 : index
    %184 = vector.load %arg2[%c80, %c0_24] : memref<256x8xf32, #tpu.memory_space<vmem>>, vector<8x8xf32>
    %185 = vector.extract_strided_slice %184 {offsets = [0, 0], sizes = [8, 1], strides = [1, 1]} : vector<8x8xf32> to vector<8x1xf32>
    %186 = vector.broadcast %185 : vector<8x1xf32> to vector<8x128xf32>
    %187 = arith.mulf %186, %9 : vector<8x128xf32>
    %188 = vector.extract_strided_slice %184 {offsets = [0, 1], sizes = [8, 1], strides = [1, 1]} : vector<8x8xf32> to vector<8x1xf32>
    %189 = vector.broadcast %188 : vector<8x1xf32> to vector<8x128xf32>
    %190 = arith.mulf %189, %12 : vector<8x128xf32>
    %191 = arith.addf %187, %190 : vector<8x128xf32>
    %192 = vector.extract_strided_slice %184 {offsets = [0, 2], sizes = [8, 1], strides = [1, 1]} : vector<8x8xf32> to vector<8x1xf32>
    %193 = vector.broadcast %192 : vector<8x1xf32> to vector<8x128xf32>
    %194 = arith.addf %191, %193 : vector<8x128xf32>
    %cst_25 = arith.constant 0.000000e+00 : f32
    %195 = vector.broadcast %cst_25 : f32 to vector<8x128xf32>
    %196 = arith.maximumf %194, %195 : vector<8x128xf32>
    %197 = vector.extract_strided_slice %184 {offsets = [0, 3], sizes = [8, 1], strides = [1, 1]} : vector<8x8xf32> to vector<8x1xf32>
    %198 = vector.broadcast %197 : vector<8x1xf32> to vector<8x128xf32>
    %199 = arith.mulf %196, %198 : vector<8x128xf32>
    %200 = arith.addf %183, %199 : vector<8x128xf32>
    %c88 = arith.constant 88 : index
    %c0_26 = arith.constant 0 : index
    %201 = vector.load %arg2[%c88, %c0_26] : memref<256x8xf32, #tpu.memory_space<vmem>>, vector<8x8xf32>
    %202 = vector.extract_strided_slice %201 {offsets = [0, 0], sizes = [8, 1], strides = [1, 1]} : vector<8x8xf32> to vector<8x1xf32>
    %203 = vector.broadcast %202 : vector<8x1xf32> to vector<8x128xf32>
    %204 = arith.mulf %203, %9 : vector<8x128xf32>
    %205 = vector.extract_strided_slice %201 {offsets = [0, 1], sizes = [8, 1], strides = [1, 1]} : vector<8x8xf32> to vector<8x1xf32>
    %206 = vector.broadcast %205 : vector<8x1xf32> to vector<8x128xf32>
    %207 = arith.mulf %206, %12 : vector<8x128xf32>
    %208 = arith.addf %204, %207 : vector<8x128xf32>
    %209 = vector.extract_strided_slice %201 {offsets = [0, 2], sizes = [8, 1], strides = [1, 1]} : vector<8x8xf32> to vector<8x1xf32>
    %210 = vector.broadcast %209 : vector<8x1xf32> to vector<8x128xf32>
    %211 = arith.addf %208, %210 : vector<8x128xf32>
    %cst_27 = arith.constant 0.000000e+00 : f32
    %212 = vector.broadcast %cst_27 : f32 to vector<8x128xf32>
    %213 = arith.maximumf %211, %212 : vector<8x128xf32>
    %214 = vector.extract_strided_slice %201 {offsets = [0, 3], sizes = [8, 1], strides = [1, 1]} : vector<8x8xf32> to vector<8x1xf32>
    %215 = vector.broadcast %214 : vector<8x1xf32> to vector<8x128xf32>
    %216 = arith.mulf %213, %215 : vector<8x128xf32>
    %217 = arith.addf %200, %216 : vector<8x128xf32>
    %c96 = arith.constant 96 : index
    %c0_28 = arith.constant 0 : index
    %218 = vector.load %arg2[%c96, %c0_28] : memref<256x8xf32, #tpu.memory_space<vmem>>, vector<8x8xf32>
    %219 = vector.extract_strided_slice %218 {offsets = [0, 0], sizes = [8, 1], strides = [1, 1]} : vector<8x8xf32> to vector<8x1xf32>
    %220 = vector.broadcast %219 : vector<8x1xf32> to vector<8x128xf32>
    %221 = arith.mulf %220, %9 : vector<8x128xf32>
    %222 = vector.extract_strided_slice %218 {offsets = [0, 1], sizes = [8, 1], strides = [1, 1]} : vector<8x8xf32> to vector<8x1xf32>
    %223 = vector.broadcast %222 : vector<8x1xf32> to vector<8x128xf32>
    %224 = arith.mulf %223, %12 : vector<8x128xf32>
    %225 = arith.addf %221, %224 : vector<8x128xf32>
    %226 = vector.extract_strided_slice %218 {offsets = [0, 2], sizes = [8, 1], strides = [1, 1]} : vector<8x8xf32> to vector<8x1xf32>
    %227 = vector.broadcast %226 : vector<8x1xf32> to vector<8x128xf32>
    %228 = arith.addf %225, %227 : vector<8x128xf32>
    %cst_29 = arith.constant 0.000000e+00 : f32
    %229 = vector.broadcast %cst_29 : f32 to vector<8x128xf32>
    %230 = arith.maximumf %228, %229 : vector<8x128xf32>
    %231 = vector.extract_strided_slice %218 {offsets = [0, 3], sizes = [8, 1], strides = [1, 1]} : vector<8x8xf32> to vector<8x1xf32>
    %232 = vector.broadcast %231 : vector<8x1xf32> to vector<8x128xf32>
    %233 = arith.mulf %230, %232 : vector<8x128xf32>
    %234 = arith.addf %217, %233 : vector<8x128xf32>
    %c104 = arith.constant 104 : index
    %c0_30 = arith.constant 0 : index
    %235 = vector.load %arg2[%c104, %c0_30] : memref<256x8xf32, #tpu.memory_space<vmem>>, vector<8x8xf32>
    %236 = vector.extract_strided_slice %235 {offsets = [0, 0], sizes = [8, 1], strides = [1, 1]} : vector<8x8xf32> to vector<8x1xf32>
    %237 = vector.broadcast %236 : vector<8x1xf32> to vector<8x128xf32>
    %238 = arith.mulf %237, %9 : vector<8x128xf32>
    %239 = vector.extract_strided_slice %235 {offsets = [0, 1], sizes = [8, 1], strides = [1, 1]} : vector<8x8xf32> to vector<8x1xf32>
    %240 = vector.broadcast %239 : vector<8x1xf32> to vector<8x128xf32>
    %241 = arith.mulf %240, %12 : vector<8x128xf32>
    %242 = arith.addf %238, %241 : vector<8x128xf32>
    %243 = vector.extract_strided_slice %235 {offsets = [0, 2], sizes = [8, 1], strides = [1, 1]} : vector<8x8xf32> to vector<8x1xf32>
    %244 = vector.broadcast %243 : vector<8x1xf32> to vector<8x128xf32>
    %245 = arith.addf %242, %244 : vector<8x128xf32>
    %cst_31 = arith.constant 0.000000e+00 : f32
    %246 = vector.broadcast %cst_31 : f32 to vector<8x128xf32>
    %247 = arith.maximumf %245, %246 : vector<8x128xf32>
    %248 = vector.extract_strided_slice %235 {offsets = [0, 3], sizes = [8, 1], strides = [1, 1]} : vector<8x8xf32> to vector<8x1xf32>
    %249 = vector.broadcast %248 : vector<8x1xf32> to vector<8x128xf32>
    %250 = arith.mulf %247, %249 : vector<8x128xf32>
    %251 = arith.addf %234, %250 : vector<8x128xf32>
    %c112 = arith.constant 112 : index
    %c0_32 = arith.constant 0 : index
    %252 = vector.load %arg2[%c112, %c0_32] : memref<256x8xf32, #tpu.memory_space<vmem>>, vector<8x8xf32>
    %253 = vector.extract_strided_slice %252 {offsets = [0, 0], sizes = [8, 1], strides = [1, 1]} : vector<8x8xf32> to vector<8x1xf32>
    %254 = vector.broadcast %253 : vector<8x1xf32> to vector<8x128xf32>
    %255 = arith.mulf %254, %9 : vector<8x128xf32>
    %256 = vector.extract_strided_slice %252 {offsets = [0, 1], sizes = [8, 1], strides = [1, 1]} : vector<8x8xf32> to vector<8x1xf32>
    %257 = vector.broadcast %256 : vector<8x1xf32> to vector<8x128xf32>
    %258 = arith.mulf %257, %12 : vector<8x128xf32>
    %259 = arith.addf %255, %258 : vector<8x128xf32>
    %260 = vector.extract_strided_slice %252 {offsets = [0, 2], sizes = [8, 1], strides = [1, 1]} : vector<8x8xf32> to vector<8x1xf32>
    %261 = vector.broadcast %260 : vector<8x1xf32> to vector<8x128xf32>
    %262 = arith.addf %259, %261 : vector<8x128xf32>
    %cst_33 = arith.constant 0.000000e+00 : f32
    %263 = vector.broadcast %cst_33 : f32 to vector<8x128xf32>
    %264 = arith.maximumf %262, %263 : vector<8x128xf32>
    %265 = vector.extract_strided_slice %252 {offsets = [0, 3], sizes = [8, 1], strides = [1, 1]} : vector<8x8xf32> to vector<8x1xf32>
    %266 = vector.broadcast %265 : vector<8x1xf32> to vector<8x128xf32>
    %267 = arith.mulf %264, %266 : vector<8x128xf32>
    %268 = arith.addf %251, %267 : vector<8x128xf32>
    %c120 = arith.constant 120 : index
    %c0_34 = arith.constant 0 : index
    %269 = vector.load %arg2[%c120, %c0_34] : memref<256x8xf32, #tpu.memory_space<vmem>>, vector<8x8xf32>
    %270 = vector.extract_strided_slice %269 {offsets = [0, 0], sizes = [8, 1], strides = [1, 1]} : vector<8x8xf32> to vector<8x1xf32>
    %271 = vector.broadcast %270 : vector<8x1xf32> to vector<8x128xf32>
    %272 = arith.mulf %271, %9 : vector<8x128xf32>
    %273 = vector.extract_strided_slice %269 {offsets = [0, 1], sizes = [8, 1], strides = [1, 1]} : vector<8x8xf32> to vector<8x1xf32>
    %274 = vector.broadcast %273 : vector<8x1xf32> to vector<8x128xf32>
    %275 = arith.mulf %274, %12 : vector<8x128xf32>
    %276 = arith.addf %272, %275 : vector<8x128xf32>
    %277 = vector.extract_strided_slice %269 {offsets = [0, 2], sizes = [8, 1], strides = [1, 1]} : vector<8x8xf32> to vector<8x1xf32>
    %278 = vector.broadcast %277 : vector<8x1xf32> to vector<8x128xf32>
    %279 = arith.addf %276, %278 : vector<8x128xf32>
    %cst_35 = arith.constant 0.000000e+00 : f32
    %280 = vector.broadcast %cst_35 : f32 to vector<8x128xf32>
    %281 = arith.maximumf %279, %280 : vector<8x128xf32>
    %282 = vector.extract_strided_slice %269 {offsets = [0, 3], sizes = [8, 1], strides = [1, 1]} : vector<8x8xf32> to vector<8x1xf32>
    %283 = vector.broadcast %282 : vector<8x1xf32> to vector<8x128xf32>
    %284 = arith.mulf %281, %283 : vector<8x128xf32>
    %285 = arith.addf %268, %284 : vector<8x128xf32>
    %c128 = arith.constant 128 : index
    %c0_36 = arith.constant 0 : index
    %286 = vector.load %arg2[%c128, %c0_36] : memref<256x8xf32, #tpu.memory_space<vmem>>, vector<8x8xf32>
    %287 = vector.extract_strided_slice %286 {offsets = [0, 0], sizes = [8, 1], strides = [1, 1]} : vector<8x8xf32> to vector<8x1xf32>
    %288 = vector.broadcast %287 : vector<8x1xf32> to vector<8x128xf32>
    %289 = arith.mulf %288, %9 : vector<8x128xf32>
    %290 = vector.extract_strided_slice %286 {offsets = [0, 1], sizes = [8, 1], strides = [1, 1]} : vector<8x8xf32> to vector<8x1xf32>
    %291 = vector.broadcast %290 : vector<8x1xf32> to vector<8x128xf32>
    %292 = arith.mulf %291, %12 : vector<8x128xf32>
    %293 = arith.addf %289, %292 : vector<8x128xf32>
    %294 = vector.extract_strided_slice %286 {offsets = [0, 2], sizes = [8, 1], strides = [1, 1]} : vector<8x8xf32> to vector<8x1xf32>
    %295 = vector.broadcast %294 : vector<8x1xf32> to vector<8x128xf32>
    %296 = arith.addf %293, %295 : vector<8x128xf32>
    %cst_37 = arith.constant 0.000000e+00 : f32
    %297 = vector.broadcast %cst_37 : f32 to vector<8x128xf32>
    %298 = arith.maximumf %296, %297 : vector<8x128xf32>
    %299 = vector.extract_strided_slice %286 {offsets = [0, 3], sizes = [8, 1], strides = [1, 1]} : vector<8x8xf32> to vector<8x1xf32>
    %300 = vector.broadcast %299 : vector<8x1xf32> to vector<8x128xf32>
    %301 = arith.mulf %298, %300 : vector<8x128xf32>
    %302 = arith.addf %285, %301 : vector<8x128xf32>
    %c136 = arith.constant 136 : index
    %c0_38 = arith.constant 0 : index
    %303 = vector.load %arg2[%c136, %c0_38] : memref<256x8xf32, #tpu.memory_space<vmem>>, vector<8x8xf32>
    %304 = vector.extract_strided_slice %303 {offsets = [0, 0], sizes = [8, 1], strides = [1, 1]} : vector<8x8xf32> to vector<8x1xf32>
    %305 = vector.broadcast %304 : vector<8x1xf32> to vector<8x128xf32>
    %306 = arith.mulf %305, %9 : vector<8x128xf32>
    %307 = vector.extract_strided_slice %303 {offsets = [0, 1], sizes = [8, 1], strides = [1, 1]} : vector<8x8xf32> to vector<8x1xf32>
    %308 = vector.broadcast %307 : vector<8x1xf32> to vector<8x128xf32>
    %309 = arith.mulf %308, %12 : vector<8x128xf32>
    %310 = arith.addf %306, %309 : vector<8x128xf32>
    %311 = vector.extract_strided_slice %303 {offsets = [0, 2], sizes = [8, 1], strides = [1, 1]} : vector<8x8xf32> to vector<8x1xf32>
    %312 = vector.broadcast %311 : vector<8x1xf32> to vector<8x128xf32>
    %313 = arith.addf %310, %312 : vector<8x128xf32>
    %cst_39 = arith.constant 0.000000e+00 : f32
    %314 = vector.broadcast %cst_39 : f32 to vector<8x128xf32>
    %315 = arith.maximumf %313, %314 : vector<8x128xf32>
    %316 = vector.extract_strided_slice %303 {offsets = [0, 3], sizes = [8, 1], strides = [1, 1]} : vector<8x8xf32> to vector<8x1xf32>
    %317 = vector.broadcast %316 : vector<8x1xf32> to vector<8x128xf32>
    %318 = arith.mulf %315, %317 : vector<8x128xf32>
    %319 = arith.addf %302, %318 : vector<8x128xf32>
    %c144 = arith.constant 144 : index
    %c0_40 = arith.constant 0 : index
    %320 = vector.load %arg2[%c144, %c0_40] : memref<256x8xf32, #tpu.memory_space<vmem>>, vector<8x8xf32>
    %321 = vector.extract_strided_slice %320 {offsets = [0, 0], sizes = [8, 1], strides = [1, 1]} : vector<8x8xf32> to vector<8x1xf32>
    %322 = vector.broadcast %321 : vector<8x1xf32> to vector<8x128xf32>
    %323 = arith.mulf %322, %9 : vector<8x128xf32>
    %324 = vector.extract_strided_slice %320 {offsets = [0, 1], sizes = [8, 1], strides = [1, 1]} : vector<8x8xf32> to vector<8x1xf32>
    %325 = vector.broadcast %324 : vector<8x1xf32> to vector<8x128xf32>
    %326 = arith.mulf %325, %12 : vector<8x128xf32>
    %327 = arith.addf %323, %326 : vector<8x128xf32>
    %328 = vector.extract_strided_slice %320 {offsets = [0, 2], sizes = [8, 1], strides = [1, 1]} : vector<8x8xf32> to vector<8x1xf32>
    %329 = vector.broadcast %328 : vector<8x1xf32> to vector<8x128xf32>
    %330 = arith.addf %327, %329 : vector<8x128xf32>
    %cst_41 = arith.constant 0.000000e+00 : f32
    %331 = vector.broadcast %cst_41 : f32 to vector<8x128xf32>
    %332 = arith.maximumf %330, %331 : vector<8x128xf32>
    %333 = vector.extract_strided_slice %320 {offsets = [0, 3], sizes = [8, 1], strides = [1, 1]} : vector<8x8xf32> to vector<8x1xf32>
    %334 = vector.broadcast %333 : vector<8x1xf32> to vector<8x128xf32>
    %335 = arith.mulf %332, %334 : vector<8x128xf32>
    %336 = arith.addf %319, %335 : vector<8x128xf32>
    %c152 = arith.constant 152 : index
    %c0_42 = arith.constant 0 : index
    %337 = vector.load %arg2[%c152, %c0_42] : memref<256x8xf32, #tpu.memory_space<vmem>>, vector<8x8xf32>
    %338 = vector.extract_strided_slice %337 {offsets = [0, 0], sizes = [8, 1], strides = [1, 1]} : vector<8x8xf32> to vector<8x1xf32>
    %339 = vector.broadcast %338 : vector<8x1xf32> to vector<8x128xf32>
    %340 = arith.mulf %339, %9 : vector<8x128xf32>
    %341 = vector.extract_strided_slice %337 {offsets = [0, 1], sizes = [8, 1], strides = [1, 1]} : vector<8x8xf32> to vector<8x1xf32>
    %342 = vector.broadcast %341 : vector<8x1xf32> to vector<8x128xf32>
    %343 = arith.mulf %342, %12 : vector<8x128xf32>
    %344 = arith.addf %340, %343 : vector<8x128xf32>
    %345 = vector.extract_strided_slice %337 {offsets = [0, 2], sizes = [8, 1], strides = [1, 1]} : vector<8x8xf32> to vector<8x1xf32>
    %346 = vector.broadcast %345 : vector<8x1xf32> to vector<8x128xf32>
    %347 = arith.addf %344, %346 : vector<8x128xf32>
    %cst_43 = arith.constant 0.000000e+00 : f32
    %348 = vector.broadcast %cst_43 : f32 to vector<8x128xf32>
    %349 = arith.maximumf %347, %348 : vector<8x128xf32>
    %350 = vector.extract_strided_slice %337 {offsets = [0, 3], sizes = [8, 1], strides = [1, 1]} : vector<8x8xf32> to vector<8x1xf32>
    %351 = vector.broadcast %350 : vector<8x1xf32> to vector<8x128xf32>
    %352 = arith.mulf %349, %351 : vector<8x128xf32>
    %353 = arith.addf %336, %352 : vector<8x128xf32>
    %c160 = arith.constant 160 : index
    %c0_44 = arith.constant 0 : index
    %354 = vector.load %arg2[%c160, %c0_44] : memref<256x8xf32, #tpu.memory_space<vmem>>, vector<8x8xf32>
    %355 = vector.extract_strided_slice %354 {offsets = [0, 0], sizes = [8, 1], strides = [1, 1]} : vector<8x8xf32> to vector<8x1xf32>
    %356 = vector.broadcast %355 : vector<8x1xf32> to vector<8x128xf32>
    %357 = arith.mulf %356, %9 : vector<8x128xf32>
    %358 = vector.extract_strided_slice %354 {offsets = [0, 1], sizes = [8, 1], strides = [1, 1]} : vector<8x8xf32> to vector<8x1xf32>
    %359 = vector.broadcast %358 : vector<8x1xf32> to vector<8x128xf32>
    %360 = arith.mulf %359, %12 : vector<8x128xf32>
    %361 = arith.addf %357, %360 : vector<8x128xf32>
    %362 = vector.extract_strided_slice %354 {offsets = [0, 2], sizes = [8, 1], strides = [1, 1]} : vector<8x8xf32> to vector<8x1xf32>
    %363 = vector.broadcast %362 : vector<8x1xf32> to vector<8x128xf32>
    %364 = arith.addf %361, %363 : vector<8x128xf32>
    %cst_45 = arith.constant 0.000000e+00 : f32
    %365 = vector.broadcast %cst_45 : f32 to vector<8x128xf32>
    %366 = arith.maximumf %364, %365 : vector<8x128xf32>
    %367 = vector.extract_strided_slice %354 {offsets = [0, 3], sizes = [8, 1], strides = [1, 1]} : vector<8x8xf32> to vector<8x1xf32>
    %368 = vector.broadcast %367 : vector<8x1xf32> to vector<8x128xf32>
    %369 = arith.mulf %366, %368 : vector<8x128xf32>
    %370 = arith.addf %353, %369 : vector<8x128xf32>
    %c168 = arith.constant 168 : index
    %c0_46 = arith.constant 0 : index
    %371 = vector.load %arg2[%c168, %c0_46] : memref<256x8xf32, #tpu.memory_space<vmem>>, vector<8x8xf32>
    %372 = vector.extract_strided_slice %371 {offsets = [0, 0], sizes = [8, 1], strides = [1, 1]} : vector<8x8xf32> to vector<8x1xf32>
    %373 = vector.broadcast %372 : vector<8x1xf32> to vector<8x128xf32>
    %374 = arith.mulf %373, %9 : vector<8x128xf32>
    %375 = vector.extract_strided_slice %371 {offsets = [0, 1], sizes = [8, 1], strides = [1, 1]} : vector<8x8xf32> to vector<8x1xf32>
    %376 = vector.broadcast %375 : vector<8x1xf32> to vector<8x128xf32>
    %377 = arith.mulf %376, %12 : vector<8x128xf32>
    %378 = arith.addf %374, %377 : vector<8x128xf32>
    %379 = vector.extract_strided_slice %371 {offsets = [0, 2], sizes = [8, 1], strides = [1, 1]} : vector<8x8xf32> to vector<8x1xf32>
    %380 = vector.broadcast %379 : vector<8x1xf32> to vector<8x128xf32>
    %381 = arith.addf %378, %380 : vector<8x128xf32>
    %cst_47 = arith.constant 0.000000e+00 : f32
    %382 = vector.broadcast %cst_47 : f32 to vector<8x128xf32>
    %383 = arith.maximumf %381, %382 : vector<8x128xf32>
    %384 = vector.extract_strided_slice %371 {offsets = [0, 3], sizes = [8, 1], strides = [1, 1]} : vector<8x8xf32> to vector<8x1xf32>
    %385 = vector.broadcast %384 : vector<8x1xf32> to vector<8x128xf32>
    %386 = arith.mulf %383, %385 : vector<8x128xf32>
    %387 = arith.addf %370, %386 : vector<8x128xf32>
    %c176 = arith.constant 176 : index
    %c0_48 = arith.constant 0 : index
    %388 = vector.load %arg2[%c176, %c0_48] : memref<256x8xf32, #tpu.memory_space<vmem>>, vector<8x8xf32>
    %389 = vector.extract_strided_slice %388 {offsets = [0, 0], sizes = [8, 1], strides = [1, 1]} : vector<8x8xf32> to vector<8x1xf32>
    %390 = vector.broadcast %389 : vector<8x1xf32> to vector<8x128xf32>
    %391 = arith.mulf %390, %9 : vector<8x128xf32>
    %392 = vector.extract_strided_slice %388 {offsets = [0, 1], sizes = [8, 1], strides = [1, 1]} : vector<8x8xf32> to vector<8x1xf32>
    %393 = vector.broadcast %392 : vector<8x1xf32> to vector<8x128xf32>
    %394 = arith.mulf %393, %12 : vector<8x128xf32>
    %395 = arith.addf %391, %394 : vector<8x128xf32>
    %396 = vector.extract_strided_slice %388 {offsets = [0, 2], sizes = [8, 1], strides = [1, 1]} : vector<8x8xf32> to vector<8x1xf32>
    %397 = vector.broadcast %396 : vector<8x1xf32> to vector<8x128xf32>
    %398 = arith.addf %395, %397 : vector<8x128xf32>
    %cst_49 = arith.constant 0.000000e+00 : f32
    %399 = vector.broadcast %cst_49 : f32 to vector<8x128xf32>
    %400 = arith.maximumf %398, %399 : vector<8x128xf32>
    %401 = vector.extract_strided_slice %388 {offsets = [0, 3], sizes = [8, 1], strides = [1, 1]} : vector<8x8xf32> to vector<8x1xf32>
    %402 = vector.broadcast %401 : vector<8x1xf32> to vector<8x128xf32>
    %403 = arith.mulf %400, %402 : vector<8x128xf32>
    %404 = arith.addf %387, %403 : vector<8x128xf32>
    %c184 = arith.constant 184 : index
    %c0_50 = arith.constant 0 : index
    %405 = vector.load %arg2[%c184, %c0_50] : memref<256x8xf32, #tpu.memory_space<vmem>>, vector<8x8xf32>
    %406 = vector.extract_strided_slice %405 {offsets = [0, 0], sizes = [8, 1], strides = [1, 1]} : vector<8x8xf32> to vector<8x1xf32>
    %407 = vector.broadcast %406 : vector<8x1xf32> to vector<8x128xf32>
    %408 = arith.mulf %407, %9 : vector<8x128xf32>
    %409 = vector.extract_strided_slice %405 {offsets = [0, 1], sizes = [8, 1], strides = [1, 1]} : vector<8x8xf32> to vector<8x1xf32>
    %410 = vector.broadcast %409 : vector<8x1xf32> to vector<8x128xf32>
    %411 = arith.mulf %410, %12 : vector<8x128xf32>
    %412 = arith.addf %408, %411 : vector<8x128xf32>
    %413 = vector.extract_strided_slice %405 {offsets = [0, 2], sizes = [8, 1], strides = [1, 1]} : vector<8x8xf32> to vector<8x1xf32>
    %414 = vector.broadcast %413 : vector<8x1xf32> to vector<8x128xf32>
    %415 = arith.addf %412, %414 : vector<8x128xf32>
    %cst_51 = arith.constant 0.000000e+00 : f32
    %416 = vector.broadcast %cst_51 : f32 to vector<8x128xf32>
    %417 = arith.maximumf %415, %416 : vector<8x128xf32>
    %418 = vector.extract_strided_slice %405 {offsets = [0, 3], sizes = [8, 1], strides = [1, 1]} : vector<8x8xf32> to vector<8x1xf32>
    %419 = vector.broadcast %418 : vector<8x1xf32> to vector<8x128xf32>
    %420 = arith.mulf %417, %419 : vector<8x128xf32>
    %421 = arith.addf %404, %420 : vector<8x128xf32>
    %c192 = arith.constant 192 : index
    %c0_52 = arith.constant 0 : index
    %422 = vector.load %arg2[%c192, %c0_52] : memref<256x8xf32, #tpu.memory_space<vmem>>, vector<8x8xf32>
    %423 = vector.extract_strided_slice %422 {offsets = [0, 0], sizes = [8, 1], strides = [1, 1]} : vector<8x8xf32> to vector<8x1xf32>
    %424 = vector.broadcast %423 : vector<8x1xf32> to vector<8x128xf32>
    %425 = arith.mulf %424, %9 : vector<8x128xf32>
    %426 = vector.extract_strided_slice %422 {offsets = [0, 1], sizes = [8, 1], strides = [1, 1]} : vector<8x8xf32> to vector<8x1xf32>
    %427 = vector.broadcast %426 : vector<8x1xf32> to vector<8x128xf32>
    %428 = arith.mulf %427, %12 : vector<8x128xf32>
    %429 = arith.addf %425, %428 : vector<8x128xf32>
    %430 = vector.extract_strided_slice %422 {offsets = [0, 2], sizes = [8, 1], strides = [1, 1]} : vector<8x8xf32> to vector<8x1xf32>
    %431 = vector.broadcast %430 : vector<8x1xf32> to vector<8x128xf32>
    %432 = arith.addf %429, %431 : vector<8x128xf32>
    %cst_53 = arith.constant 0.000000e+00 : f32
    %433 = vector.broadcast %cst_53 : f32 to vector<8x128xf32>
    %434 = arith.maximumf %432, %433 : vector<8x128xf32>
    %435 = vector.extract_strided_slice %422 {offsets = [0, 3], sizes = [8, 1], strides = [1, 1]} : vector<8x8xf32> to vector<8x1xf32>
    %436 = vector.broadcast %435 : vector<8x1xf32> to vector<8x128xf32>
    %437 = arith.mulf %434, %436 : vector<8x128xf32>
    %438 = arith.addf %421, %437 : vector<8x128xf32>
    %c200 = arith.constant 200 : index
    %c0_54 = arith.constant 0 : index
    %439 = vector.load %arg2[%c200, %c0_54] : memref<256x8xf32, #tpu.memory_space<vmem>>, vector<8x8xf32>
    %440 = vector.extract_strided_slice %439 {offsets = [0, 0], sizes = [8, 1], strides = [1, 1]} : vector<8x8xf32> to vector<8x1xf32>
    %441 = vector.broadcast %440 : vector<8x1xf32> to vector<8x128xf32>
    %442 = arith.mulf %441, %9 : vector<8x128xf32>
    %443 = vector.extract_strided_slice %439 {offsets = [0, 1], sizes = [8, 1], strides = [1, 1]} : vector<8x8xf32> to vector<8x1xf32>
    %444 = vector.broadcast %443 : vector<8x1xf32> to vector<8x128xf32>
    %445 = arith.mulf %444, %12 : vector<8x128xf32>
    %446 = arith.addf %442, %445 : vector<8x128xf32>
    %447 = vector.extract_strided_slice %439 {offsets = [0, 2], sizes = [8, 1], strides = [1, 1]} : vector<8x8xf32> to vector<8x1xf32>
    %448 = vector.broadcast %447 : vector<8x1xf32> to vector<8x128xf32>
    %449 = arith.addf %446, %448 : vector<8x128xf32>
    %cst_55 = arith.constant 0.000000e+00 : f32
    %450 = vector.broadcast %cst_55 : f32 to vector<8x128xf32>
    %451 = arith.maximumf %449, %450 : vector<8x128xf32>
    %452 = vector.extract_strided_slice %439 {offsets = [0, 3], sizes = [8, 1], strides = [1, 1]} : vector<8x8xf32> to vector<8x1xf32>
    %453 = vector.broadcast %452 : vector<8x1xf32> to vector<8x128xf32>
    %454 = arith.mulf %451, %453 : vector<8x128xf32>
    %455 = arith.addf %438, %454 : vector<8x128xf32>
    %c208 = arith.constant 208 : index
    %c0_56 = arith.constant 0 : index
    %456 = vector.load %arg2[%c208, %c0_56] : memref<256x8xf32, #tpu.memory_space<vmem>>, vector<8x8xf32>
    %457 = vector.extract_strided_slice %456 {offsets = [0, 0], sizes = [8, 1], strides = [1, 1]} : vector<8x8xf32> to vector<8x1xf32>
    %458 = vector.broadcast %457 : vector<8x1xf32> to vector<8x128xf32>
    %459 = arith.mulf %458, %9 : vector<8x128xf32>
    %460 = vector.extract_strided_slice %456 {offsets = [0, 1], sizes = [8, 1], strides = [1, 1]} : vector<8x8xf32> to vector<8x1xf32>
    %461 = vector.broadcast %460 : vector<8x1xf32> to vector<8x128xf32>
    %462 = arith.mulf %461, %12 : vector<8x128xf32>
    %463 = arith.addf %459, %462 : vector<8x128xf32>
    %464 = vector.extract_strided_slice %456 {offsets = [0, 2], sizes = [8, 1], strides = [1, 1]} : vector<8x8xf32> to vector<8x1xf32>
    %465 = vector.broadcast %464 : vector<8x1xf32> to vector<8x128xf32>
    %466 = arith.addf %463, %465 : vector<8x128xf32>
    %cst_57 = arith.constant 0.000000e+00 : f32
    %467 = vector.broadcast %cst_57 : f32 to vector<8x128xf32>
    %468 = arith.maximumf %466, %467 : vector<8x128xf32>
    %469 = vector.extract_strided_slice %456 {offsets = [0, 3], sizes = [8, 1], strides = [1, 1]} : vector<8x8xf32> to vector<8x1xf32>
    %470 = vector.broadcast %469 : vector<8x1xf32> to vector<8x128xf32>
    %471 = arith.mulf %468, %470 : vector<8x128xf32>
    %472 = arith.addf %455, %471 : vector<8x128xf32>
    %c216 = arith.constant 216 : index
    %c0_58 = arith.constant 0 : index
    %473 = vector.load %arg2[%c216, %c0_58] : memref<256x8xf32, #tpu.memory_space<vmem>>, vector<8x8xf32>
    %474 = vector.extract_strided_slice %473 {offsets = [0, 0], sizes = [8, 1], strides = [1, 1]} : vector<8x8xf32> to vector<8x1xf32>
    %475 = vector.broadcast %474 : vector<8x1xf32> to vector<8x128xf32>
    %476 = arith.mulf %475, %9 : vector<8x128xf32>
    %477 = vector.extract_strided_slice %473 {offsets = [0, 1], sizes = [8, 1], strides = [1, 1]} : vector<8x8xf32> to vector<8x1xf32>
    %478 = vector.broadcast %477 : vector<8x1xf32> to vector<8x128xf32>
    %479 = arith.mulf %478, %12 : vector<8x128xf32>
    %480 = arith.addf %476, %479 : vector<8x128xf32>
    %481 = vector.extract_strided_slice %473 {offsets = [0, 2], sizes = [8, 1], strides = [1, 1]} : vector<8x8xf32> to vector<8x1xf32>
    %482 = vector.broadcast %481 : vector<8x1xf32> to vector<8x128xf32>
    %483 = arith.addf %480, %482 : vector<8x128xf32>
    %cst_59 = arith.constant 0.000000e+00 : f32
    %484 = vector.broadcast %cst_59 : f32 to vector<8x128xf32>
    %485 = arith.maximumf %483, %484 : vector<8x128xf32>
    %486 = vector.extract_strided_slice %473 {offsets = [0, 3], sizes = [8, 1], strides = [1, 1]} : vector<8x8xf32> to vector<8x1xf32>
    %487 = vector.broadcast %486 : vector<8x1xf32> to vector<8x128xf32>
    %488 = arith.mulf %485, %487 : vector<8x128xf32>
    %489 = arith.addf %472, %488 : vector<8x128xf32>
    %c224 = arith.constant 224 : index
    %c0_60 = arith.constant 0 : index
    %490 = vector.load %arg2[%c224, %c0_60] : memref<256x8xf32, #tpu.memory_space<vmem>>, vector<8x8xf32>
    %491 = vector.extract_strided_slice %490 {offsets = [0, 0], sizes = [8, 1], strides = [1, 1]} : vector<8x8xf32> to vector<8x1xf32>
    %492 = vector.broadcast %491 : vector<8x1xf32> to vector<8x128xf32>
    %493 = arith.mulf %492, %9 : vector<8x128xf32>
    %494 = vector.extract_strided_slice %490 {offsets = [0, 1], sizes = [8, 1], strides = [1, 1]} : vector<8x8xf32> to vector<8x1xf32>
    %495 = vector.broadcast %494 : vector<8x1xf32> to vector<8x128xf32>
    %496 = arith.mulf %495, %12 : vector<8x128xf32>
    %497 = arith.addf %493, %496 : vector<8x128xf32>
    %498 = vector.extract_strided_slice %490 {offsets = [0, 2], sizes = [8, 1], strides = [1, 1]} : vector<8x8xf32> to vector<8x1xf32>
    %499 = vector.broadcast %498 : vector<8x1xf32> to vector<8x128xf32>
    %500 = arith.addf %497, %499 : vector<8x128xf32>
    %cst_61 = arith.constant 0.000000e+00 : f32
    %501 = vector.broadcast %cst_61 : f32 to vector<8x128xf32>
    %502 = arith.maximumf %500, %501 : vector<8x128xf32>
    %503 = vector.extract_strided_slice %490 {offsets = [0, 3], sizes = [8, 1], strides = [1, 1]} : vector<8x8xf32> to vector<8x1xf32>
    %504 = vector.broadcast %503 : vector<8x1xf32> to vector<8x128xf32>
    %505 = arith.mulf %502, %504 : vector<8x128xf32>
    %506 = arith.addf %489, %505 : vector<8x128xf32>
    %c232 = arith.constant 232 : index
    %c0_62 = arith.constant 0 : index
    %507 = vector.load %arg2[%c232, %c0_62] : memref<256x8xf32, #tpu.memory_space<vmem>>, vector<8x8xf32>
    %508 = vector.extract_strided_slice %507 {offsets = [0, 0], sizes = [8, 1], strides = [1, 1]} : vector<8x8xf32> to vector<8x1xf32>
    %509 = vector.broadcast %508 : vector<8x1xf32> to vector<8x128xf32>
    %510 = arith.mulf %509, %9 : vector<8x128xf32>
    %511 = vector.extract_strided_slice %507 {offsets = [0, 1], sizes = [8, 1], strides = [1, 1]} : vector<8x8xf32> to vector<8x1xf32>
    %512 = vector.broadcast %511 : vector<8x1xf32> to vector<8x128xf32>
    %513 = arith.mulf %512, %12 : vector<8x128xf32>
    %514 = arith.addf %510, %513 : vector<8x128xf32>
    %515 = vector.extract_strided_slice %507 {offsets = [0, 2], sizes = [8, 1], strides = [1, 1]} : vector<8x8xf32> to vector<8x1xf32>
    %516 = vector.broadcast %515 : vector<8x1xf32> to vector<8x128xf32>
    %517 = arith.addf %514, %516 : vector<8x128xf32>
    %cst_63 = arith.constant 0.000000e+00 : f32
    %518 = vector.broadcast %cst_63 : f32 to vector<8x128xf32>
    %519 = arith.maximumf %517, %518 : vector<8x128xf32>
    %520 = vector.extract_strided_slice %507 {offsets = [0, 3], sizes = [8, 1], strides = [1, 1]} : vector<8x8xf32> to vector<8x1xf32>
    %521 = vector.broadcast %520 : vector<8x1xf32> to vector<8x128xf32>
    %522 = arith.mulf %519, %521 : vector<8x128xf32>
    %523 = arith.addf %506, %522 : vector<8x128xf32>
    %c240 = arith.constant 240 : index
    %c0_64 = arith.constant 0 : index
    %524 = vector.load %arg2[%c240, %c0_64] : memref<256x8xf32, #tpu.memory_space<vmem>>, vector<8x8xf32>
    %525 = vector.extract_strided_slice %524 {offsets = [0, 0], sizes = [8, 1], strides = [1, 1]} : vector<8x8xf32> to vector<8x1xf32>
    %526 = vector.broadcast %525 : vector<8x1xf32> to vector<8x128xf32>
    %527 = arith.mulf %526, %9 : vector<8x128xf32>
    %528 = vector.extract_strided_slice %524 {offsets = [0, 1], sizes = [8, 1], strides = [1, 1]} : vector<8x8xf32> to vector<8x1xf32>
    %529 = vector.broadcast %528 : vector<8x1xf32> to vector<8x128xf32>
    %530 = arith.mulf %529, %12 : vector<8x128xf32>
    %531 = arith.addf %527, %530 : vector<8x128xf32>
    %532 = vector.extract_strided_slice %524 {offsets = [0, 2], sizes = [8, 1], strides = [1, 1]} : vector<8x8xf32> to vector<8x1xf32>
    %533 = vector.broadcast %532 : vector<8x1xf32> to vector<8x128xf32>
    %534 = arith.addf %531, %533 : vector<8x128xf32>
    %cst_65 = arith.constant 0.000000e+00 : f32
    %535 = vector.broadcast %cst_65 : f32 to vector<8x128xf32>
    %536 = arith.maximumf %534, %535 : vector<8x128xf32>
    %537 = vector.extract_strided_slice %524 {offsets = [0, 3], sizes = [8, 1], strides = [1, 1]} : vector<8x8xf32> to vector<8x1xf32>
    %538 = vector.broadcast %537 : vector<8x1xf32> to vector<8x128xf32>
    %539 = arith.mulf %536, %538 : vector<8x128xf32>
    %540 = arith.addf %523, %539 : vector<8x128xf32>
    %c248 = arith.constant 248 : index
    %c0_66 = arith.constant 0 : index
    %541 = vector.load %arg2[%c248, %c0_66] : memref<256x8xf32, #tpu.memory_space<vmem>>, vector<8x8xf32>
    %542 = vector.extract_strided_slice %541 {offsets = [0, 0], sizes = [8, 1], strides = [1, 1]} : vector<8x8xf32> to vector<8x1xf32>
    %543 = vector.broadcast %542 : vector<8x1xf32> to vector<8x128xf32>
    %544 = arith.mulf %543, %9 : vector<8x128xf32>
    %545 = vector.extract_strided_slice %541 {offsets = [0, 1], sizes = [8, 1], strides = [1, 1]} : vector<8x8xf32> to vector<8x1xf32>
    %546 = vector.broadcast %545 : vector<8x1xf32> to vector<8x128xf32>
    %547 = arith.mulf %546, %12 : vector<8x128xf32>
    %548 = arith.addf %544, %547 : vector<8x128xf32>
    %549 = vector.extract_strided_slice %541 {offsets = [0, 2], sizes = [8, 1], strides = [1, 1]} : vector<8x8xf32> to vector<8x1xf32>
    %550 = vector.broadcast %549 : vector<8x1xf32> to vector<8x128xf32>
    %551 = arith.addf %548, %550 : vector<8x128xf32>
    %cst_67 = arith.constant 0.000000e+00 : f32
    %552 = vector.broadcast %cst_67 : f32 to vector<8x128xf32>
    %553 = arith.maximumf %551, %552 : vector<8x128xf32>
    %554 = vector.extract_strided_slice %541 {offsets = [0, 3], sizes = [8, 1], strides = [1, 1]} : vector<8x8xf32> to vector<8x1xf32>
    %555 = vector.broadcast %554 : vector<8x1xf32> to vector<8x128xf32>
    %556 = arith.mulf %553, %555 : vector<8x128xf32>
    %557 = arith.addf %540, %556 : vector<8x128xf32>
    %cst_68 = arith.constant dense<0.000000e+00> : vector<128xf32>
    %558 = vector.multi_reduction <add>, %557, %cst_68 [0] : vector<8x128xf32> to vector<128xf32>
    %559 = vector.shape_cast %558 : vector<128xf32> to vector<1x128xf32>
    %560 = vector.broadcast %0 : f32 to vector<1x128xf32>
    %561 = arith.addf %559, %560 : vector<1x128xf32>
    %c0_69 = arith.constant 0 : index
    %562 = arith.index_cast %4 : i32 to index
    %563 = vector.load %arg4[%c0_69, %562] : memref<1x128xf32, #tpu.memory_space<vmem>>, vector<1x128xf32>
    tpu.vector_store %arg4[%c0_69, %562], %561 {strides = array<i32>} : memref<1x128xf32, #tpu.memory_space<vmem>>, vector<1x128xf32>,
    %c1_i32_70 = arith.constant 1 : i32
    return
  }
  func.func @transform_0(%arg0: i32) -> (i32, i32) {
    %c0_i32 = arith.constant 0 : i32
    %c0_i32_0 = arith.constant 0 : i32
    return %c0_i32, %arg0 : i32, i32
  }
  func.func @transform_1(%arg0: i32) -> (i32, i32) {
    %c0_i32 = arith.constant 0 : i32
    %c0_i32_0 = arith.constant 0 : i32
    %c0_i32_1 = arith.constant 0 : i32
    return %c0_i32, %c0_i32_0 : i32, i32
  }
  func.func @transform_2(%arg0: i32) -> (i32, i32) {
    %c0_i32 = arith.constant 0 : i32
    %c0_i32_0 = arith.constant 0 : i32
    %c0_i32_1 = arith.constant 0 : i32
    return %c0_i32, %c0_i32_0 : i32, i32
  }
  func.func @transform_3(%arg0: i32) -> (i32, i32) {
    %c0_i32 = arith.constant 0 : i32
    %c0_i32_0 = arith.constant 0 : i32
    return %c0_i32, %arg0 : i32, i32
  }
}

</mosaic_0001>

<bundles_post_ra>
// kernel: tpu_custom_call.1
= control target key start
LH: loop header
LB: loop body
LE: loop exit
PB: predicated region body
PF: predicated region fallthrough
CT: control target
= control target key end

     0   :  { %v1577_v2 = vmov 3   ;;  %v1583_v3 = vmov 2   ;;  %s1573_s0 = inlined_call_operand.vmem [shape: f32[2,128], index: 0, kind: input, shape index: {}]   ;;  %s1574_s1 = inlined_call_operand.vmem [shape: f32[256,8], index: 1, kind: input, shape index: {}]   ;;  %s1575_s2 = inlined_call_operand.<no memory space> [shape: f32[1,1], index: 2, kind: input, shape index: {}]   ;;  %s1576_s3 = inlined_call_operand.hbm [shape: f32[1,128], index: 3, kind: output, shape index: {}]  }
   0x1   :  { %v51_v0 = vld [vmem:[%s1574_s1 + $0x8] sm:$0xff]  ;;  %v997_v1 = vld [vmem:[%s1574_s1] sm:$0xff]  ;;  %858 = vset.pattern.permute.xlu0 %v1577_v2  ;;  %854 = vset.pattern.permute.xlu1 %v1583_v3  ;;  %v1013_v5 = vld [vmem:[%s1574_s1 + $0x38] sm:$0xff] }
   0x2   :  { %71 = vperm.xlu0 %858, %v51_v0   ;;  %40 = vperm.xlu1 %854, %v997_v1   ;;  %v1005_v4 = vld [vmem:[%s1574_s1 + $0x20] sm:$0xff] }
   0x6   :  { %146 = vperm.xlu0 %858, %v1005_v4   ;;  %855 = vset.pattern.permute.xlu1 %v1577_v2 }
   0x7   :  { %46 = vperm.xlu1 %855, %v997_v1  }
   0x8   :  { %9 = vsyncpa [#allocation4], 0  ;;  %v1581_v6 = vmov 0   ;;  %v1020_v7 = vld [vmem:[%s1574_s1 + $0x50] sm:$0xff]  ;;  %v151_v9 = vld [vmem:[%s1574_s1 + $0x28] sm:$0xff]  ;;  %v1579_v11 = vmov 1  }
   0x9   :  { %v76_v8 = vld [vmem:[%s1574_s1 + $0x10] sm:$0xff]  ;;  %v1035_v10 = vld [vmem:[%s1574_s1 + $0x40] sm:$0xff]  ;;  %v1042_v12 = vld [vmem:[%s1574_s1 + $0x58] sm:$0xff]  ;;  %s970_s24 = smov [#allocation3]  }
   0xa   :  { %221 = vperm.xlu0 %858, %v1013_v5   ;;  %v1049_v13 = vld [vmem:[%s1574_s1 + $0x70] sm:$0xff]  ;;  %v101_v14 = vld [vmem:[%s1574_s1 + $0x18] sm:$0xff]  ;;  %v1059_v15 = vld [vmem:[%s1574_s1 + $0x88] sm:$0xff]  ;;  %s841_s25 = sshll.u32 %s970_s24, 4  ;;  %s842_s25 = int_to_ptr.vmem [resolvable:$true] %s841_s25 }
   0xb   :  { %856 = vset.pattern.permute.xlu1 %v1581_v6  ;;  %v1065_v16 = vld [vmem:[%s1574_s1 + $0xa0] sm:$0xff]  ;;  %v1072_v17 = vld [vmem:[%s1574_s1 + $0xb8] sm:$0xff]  ;;  %v1079_v18 = vld [vmem:[%s1574_s1 + $0xd0] sm:$0xff]  ;;  %s942_s26 = scalar_lea.vmem %s842_s25, 16  ;;  %s946_s27 = scalar_lea.vmem %s842_s25, 32 }
   0xc   :  { %54 = vperm.xlu1 %856, %v51_v0   ;;  %v176_v19 = vld [vmem:[%s1574_s1 + $0x30] sm:$0xff]  ;;  %v251_v20 = vld [vmem:[%s1574_s1 + $0x48] sm:$0xff]  ;;  %v1100_v21 = vld [vmem:[%s1574_s1 + $0x60] sm:$0xff]  ;;  %p943_p0 = scmp.ne.s32.totalorder %s842_s25, %s942_s26  ;;  %p947_p1 = scmp.lt.s32.totalorder %s842_s25, %s842_s25 }
   0xd   :  { %v1107_v22 = vld [vmem:[%s1574_s1 + $0x78] sm:$0xff]  ;;  %v1114_v23 = vld [vmem:[%s1574_s1 + $0x90] sm:$0xff]  ;;  %v1120_v24 = vld [vmem:[%s1574_s1 + $0xa8] sm:$0xff]  ;;  %p948_p2 = scmp.lt.s32.totalorder %s946_s27, %s942_s26 }
   0xe   :  { %296 = vperm.xlu0 %858, %v1020_v7   ;;  %v1127_v25 = vld [vmem:[%s1574_s1 + $0xc0] sm:$0xff]  ;;  %v1135_v26 = vld [vmem:[%s1574_s1 + $0xe8] sm:$0xff]  ;;  %v1168_v29 = vld [vmem:[%s1574_s1 + $0x98] sm:$0xff] }
   0xf   :  { %1589 = vst [vmem:[#allocation6_spill] sm:$0xff] %v1135_v26  ;;  %v1154_v27 = vld [vmem:[%s1574_s1 + $0x68] sm:$0xff]  ;;  %v1161_v28 = vld [vmem:[%s1574_s1 + $0x80] sm:$0xff]  ;;  %v1175_v30 = vld [vmem:[%s1574_s1 + $0xb0] sm:$0xff]  ;;  %p949_p3 = por %p948_p2, %p947_p1 }
  0x10   :  { %857 = vset.pattern.permute.xlu1 %v1583_v3  ;;  %v1185_v33 = vld [vmem:[%s1574_s1 + $0xc8] sm:$0xff]  ;;  %v1202_v37 = vld [vmem:[%s1574_s1 + $0xd8] sm:$0xff]  ;;  %v1214_v40 = vld [vmem:[%s1574_s1 + $0xf0] sm:$0xff] }
  0x11   :  { %65 = vperm.xlu1 %857, %v51_v0   ;;  %1590 = vst [vmem:[#allocation7_spill] sm:$0xff] %v1214_v40  ;;  %p950_p4 = pnand %p949_p3, %p943_p0 }
  0x12   :  { %883 = vset.pattern.permute.xlu0 %v1583_v3 }
  0x13   :  { %90 = vperm.xlu0 %883, %v76_v8  }
  0x15   :  { %859 = vset.pattern.permute.xlu1 %v1581_v6 }
  0x16   :  { %79 = vperm.xlu1 %859, %v76_v8  }
  0x17   :  { %165 = vperm.xlu0 %883, %v151_v9  }
  0x1a   :  { %860 = vset.pattern.permute.xlu1 %v1579_v11 }
  0x1b   :  { %240 = vperm.xlu0 %883, %v1035_v10   ;;  %84 = vperm.xlu1 %860, %v76_v8  }
  0x1f   :  { %315 = vperm.xlu0 %883, %v1042_v12   ;;  %861 = vset.pattern.permute.xlu1 %v1577_v2 }
  0x20   :  { %96 = vperm.xlu1 %861, %v76_v8   ;;  %v18_v8 = vlaneseq }
  0x23   :  { %390 = vperm.xlu0 %883, %v1049_v13  }
  0x24   :  { %862 = vset.pattern.permute.xlu1 %v1581_v6 }
  0x25   :  { %104 = vperm.xlu1 %862, %v101_v14  }
  0x27   :  { %465 = vperm.xlu0 %883, %v1059_v15  }
  0x29   :  { %863 = vset.pattern.permute.xlu1 %v1583_v3 }
  0x2a   :  { %115 = vperm.xlu1 %863, %v101_v14  }
  0x2b   :  { %540 = vperm.xlu0 %883, %v1065_v16  }
  0x2e   :  { %864 = vset.pattern.permute.xlu1 %v1577_v2 }
  0x2f   :  { %615 = vperm.xlu0 %883, %v1072_v17   ;;  %121 = vperm.xlu1 %864, %v101_v14  }
  0x33   :  { %690 = vperm.xlu0 %883, %v1079_v18   ;;  %865 = vset.pattern.permute.xlu1 %v1579_v11 }
  0x34   :  { %134 = vperm.xlu1 %865, %v1005_v4  }
  0x37   :  { %925 = vset.pattern.permute.xlu0 %v1579_v11 }
  0x38   :  { %34 = vperm.xlu0 %925, %v997_v1   ;;  %866 = vset.pattern.permute.xlu1 %v1583_v3 }
  0x39   :  { %140 = vperm.xlu1 %866, %v1005_v4  }
  0x3c   :  { %59 = vperm.xlu0 %925, %v51_v0  }
  0x3d   :  { %867 = vset.pattern.permute.xlu1 %v1581_v6 }
  0x3e   :  { %154 = vperm.xlu1 %867, %v151_v9  }
  0x40   :  { %109 = vperm.xlu0 %925, %v101_v14  }
  0x42   :  { %868 = vset.pattern.permute.xlu1 %v1579_v11 }
  0x43   :  { %159 = vperm.xlu1 %868, %v151_v9  }
  0x44   :  { %184 = vperm.xlu0 %925, %v176_v19  }
  0x47   :  { %869 = vset.pattern.permute.xlu1 %v1577_v2 }
  0x48   :  { %259 = vperm.xlu0 %925, %v251_v20   ;;  %171 = vperm.xlu1 %869, %v151_v9  }
  0x4c   :  { %334 = vperm.xlu0 %925, %v1100_v21   ;;  %870 = vset.pattern.permute.xlu1 %v1581_v6 }
  0x4d   :  { %179 = vperm.xlu1 %870, %v176_v19  }
  0x50   :  { %409 = vperm.xlu0 %925, %v1107_v22  }
  0x51   :  { %871 = vset.pattern.permute.xlu1 %v1583_v3 }
  0x52   :  { %190 = vperm.xlu1 %871, %v176_v19  }
  0x54   :  { %484 = vperm.xlu0 %925, %v1114_v23  }
  0x56   :  { %872 = vset.pattern.permute.xlu1 %v1577_v2 }
  0x57   :  { %196 = vperm.xlu1 %872, %v176_v19  }
  0x58   :  { %559 = vperm.xlu0 %925, %v1120_v24  }
  0x5b   :  { %873 = vset.pattern.permute.xlu1 %v1579_v11 }
  0x5c   :  { %634 = vperm.xlu0 %925, %v1127_v25   ;;  %209 = vperm.xlu1 %873, %v1013_v5  }
  0x60   :  { %759 = vperm.xlu0 %925, %v1135_v26   ;;  %874 = vset.pattern.permute.xlu1 %v1583_v3 }
  0x61   :  { %215 = vperm.xlu1 %874, %v1013_v5  }
  0x64   :  { %930 = vset.pattern.permute.xlu0 %v1581_v6 }
  0x65   :  { %29 = vperm.xlu0 %930, %v997_v1   ;;  %875 = vset.pattern.permute.xlu1 %v1581_v6 }
  0x66   :  { %229 = vperm.xlu1 %875, %v1035_v10  }
  0x69   :  { %129 = vperm.xlu0 %930, %v1005_v4  }
  0x6a   :  { %876 = vset.pattern.permute.xlu1 %v1579_v11 }
  0x6b   :  { %234 = vperm.xlu1 %876, %v1035_v10  }
  0x6d   :  { %204 = vperm.xlu0 %930, %v1013_v5  }
  0x6f   :  { %877 = vset.pattern.permute.xlu1 %v1577_v2 }
  0x70   :  { %246 = vperm.xlu1 %877, %v1035_v10  }
  0x71   :  { %279 = vperm.xlu0 %930, %v1020_v7  }
  0x74   :  { %878 = vset.pattern.permute.xlu1 %v1581_v6 }
  0x75   :  { %254 = vperm.xlu1 %878, %v251_v20   ;;  %354 = vperm.xlu0 %930, %v1154_v27  }
  0x79   :  { %879 = vset.pattern.permute.xlu1 %v1583_v3  ;;  %429 = vperm.xlu0 %930, %v1161_v28  }
  0x7a   :  { %265 = vperm.xlu1 %879, %v251_v20  }
  0x7d   :  { %504 = vperm.xlu0 %930, %v1168_v29  }
  0x7e   :  { %880 = vset.pattern.permute.xlu1 %v1577_v2 }
  0x7f   :  { %271 = vperm.xlu1 %880, %v251_v20  }
  0x81   :  { %v1177_v31 = vpop.permute.xlu1 %40  ;;  %v1179_v32 = vpop.permute.xlu0 %71  ;;  %579 = vperm.xlu0 %930, %v1175_v30  }
  0x83   :  { %881 = vset.pattern.permute.xlu1 %v1579_v11 }
  0x84   :  { %284 = vperm.xlu1 %881, %v1020_v7  }
  0x85   :  { %v1189_v34 = vpop.permute.xlu0 %146  ;;  %654 = vperm.xlu0 %930, %v1185_v33  }
  0x86   :  { %v1192_v35 = vpop.permute.xlu1 %46 }
  0x88   :  { %882 = vset.pattern.permute.xlu1 %v1583_v3 }
  0x89   :  { %290 = vperm.xlu1 %882, %v1020_v7   ;;  %v1196_v36 = vpop.permute.xlu0 %221  ;;  %679 = vperm.xlu0 %930, %v1079_v18  }
  0x8b   :  { %v1204_v38 = vpop.permute.xlu1 %54 }
  0x8d   :  { %884 = vset.pattern.permute.xlu1 %v1581_v6  ;;  %v1207_v39 = vpop.permute.xlu0 %296  ;;  %704 = vperm.xlu0 %930, %v1202_v37  }
  0x8e   :  { %304 = vperm.xlu1 %884, %v1042_v12  }
  0x90   :  { %v1216_v41 = vpop.permute.xlu1 %65 }
  0x91   :  { %779 = vperm.xlu0 %930, %v1214_v40  }
  0x92   :  { %885 = vset.pattern.permute.xlu1 %v1579_v11  ;;  %v1220_v42 = vpop.permute.xlu0 %90 }
  0x93   :  { %309 = vperm.xlu1 %885, %v1042_v12  }
  0x95   :  { %v1223_v43 = vpop.permute.xlu1 %79  ;;  %933 = vset.pattern.permute.xlu0 %v1577_v2 }
  0x96   :  { %v1226_v44 = vpop.permute.xlu0 %165  ;;  %371 = vperm.xlu0 %933, %v1154_v27  }
  0x97   :  { %886 = vset.pattern.permute.xlu1 %v1577_v2 }
  0x98   :  { %321 = vperm.xlu1 %886, %v1042_v12   ;;  %v19_v12 = vshrl.u32 %v18_v8, 7 }
  0x9a   :  { %v1231_v45 = vpop.permute.xlu1 %84  ;;  %v1233_v46 = vpop.permute.xlu0 %240  ;;  %446 = vperm.xlu0 %933, %v1161_v28   ;;  %v20_v14 = vsub.s32 0, %v19_v12  ;;  %v24_v19 = vsub.s32 1, %v19_v12 }
  0x9c   :  { %887 = vset.pattern.permute.xlu1 %v1581_v6 }
  0x9d   :  { %329 = vperm.xlu1 %887, %v1100_v21  }
  0x9e   :  { %v1238_v47 = vpop.permute.xlu0 %315  ;;  %521 = vperm.xlu0 %933, %v1168_v29  }
  0x9f   :  { %v1241_v48 = vpop.permute.xlu1 %96 }
  0xa1   :  { %888 = vset.pattern.permute.xlu1 %v1583_v3 }
  0xa2   :  { %340 = vperm.xlu1 %888, %v1100_v21   ;;  %v1245_v49 = vpop.permute.xlu0 %390  ;;  %596 = vperm.xlu0 %933, %v1175_v30  }
  0xa4   :  { %v1248_v50 = vpop.permute.xlu1 %104 }
  0xa6   :  { %889 = vset.pattern.permute.xlu1 %v1577_v2  ;;  %v1251_v51 = vpop.permute.xlu0 %465  ;;  %671 = vperm.xlu0 %933, %v1185_v33  }
  0xa7   :  { %346 = vperm.xlu1 %889, %v1100_v21   ;;  %v17_v21 = vld [vmem:[%s1573_s0] sm:$0x3] }
  0xa8   :  { %v1314_v8 = vrot.slane %v17_v21, %v24_v19 }
  0xa9   :  { %v1255_v52 = vpop.permute.xlu1 %115 }
  0xaa   :  { %v1257_v53 = vpop.permute.xlu0 %540 }
  0xab   :  { %1591 = vst [vmem:[#allocation8_spill] sm:$0xff] %v1257_v53  ;;  %890 = vset.pattern.permute.xlu1 %v1579_v11  ;;  %v1599_v53 = vmov 3  }
  0xac   :  { %359 = vperm.xlu1 %890, %v1154_v27  }
  0xae   :  { %v1261_v54 = vpop.permute.xlu1 %121  ;;  %v1263_v55 = vpop.permute.xlu0 %615 }
  0xaf   :  { %1592 = vst [vmem:[#allocation9_spill] sm:$0xff] %v1263_v55 }
  0xb0   :  { %891 = vset.pattern.permute.xlu1 %v1583_v3 }
  0xb1   :  { %365 = vperm.xlu1 %891, %v1154_v27   ;;  %v1312_v27 = vrot.slane %v17_v21, %v20_v14  ;;  %v87_v14 = vmul.f32 %v1231_v45, %v1314_v8 }
  0xb2   :  { %v1267_v56 = vpop.permute.xlu0 %690 }
  0xb3   :  { %1593 = vst [vmem:[#allocation10_spill] sm:$0xff] %v1267_v56  ;;  %v1269_v57 = vpop.permute.xlu1 %134  ;;  %v57_v56 = vmul.f32 %v1204_v38, %v1312_v27  ;;  %v82_v38 = vmul.f32 %v1223_v43, %v1312_v27  ;;  %v107_v55 = vmul.f32 %v1248_v50, %v1312_v27 }
  0xb5   :  { %892 = vset.pattern.permute.xlu1 %v1581_v6 }
  0xb6   :  { %379 = vperm.xlu1 %892, %v1049_v13  }
  0xb7   :  { %v35_v58 = vpop.permute.xlu0 %34 }
  0xb8   :  { %v1273_v59 = vpop.permute.xlu1 %140  ;;  %v37_v45 = vmul.f32 %v35_v58, %v1314_v8 }
  0xba   :  { %893 = vset.pattern.permute.xlu1 %v1579_v11 }
  0xbb   :  { %v60_v60 = vpop.permute.xlu0 %59  ;;  %384 = vperm.xlu1 %893, %v1049_v13  }
  0xbc   :  { %v62_v12 = vmul.f32 %v60_v60, %v1314_v8 }
  0xbd   :  { %v155_v61 = vpop.permute.xlu1 %154 }
  0xbe   :  { %v63_v60 = vadd.f32 %v62_v12, %v57_v56  ;;  %v157_v58 = vmul.f32 %v155_v61, %v1312_v27 }
  0xbf   :  { %v110_v62 = vpop.permute.xlu0 %109  ;;  %894 = vset.pattern.permute.xlu1 %v1577_v2 }
  0xc0   :  { %396 = vperm.xlu1 %894, %v1049_v13   ;;  %v68_v56 = vadd.f32 %v1216_v41, %v63_v60  ;;  %v137_v41 = vmul.f32 %v1269_v57, %v1314_v8 }
  0xc2   :  { %v160_v63 = vpop.permute.xlu1 %159  ;;  %v69_v60 = vmax.f32 %v68_v56, 0.0 }
  0xc3   :  { %v1279_v0 = vpop.permute.xlu0 %184 }
  0xc4   :  { %895 = vset.pattern.permute.xlu1 %v1581_v6 }
  0xc5   :  { %404 = vperm.xlu1 %895, %v1107_v22  }
  0xc7   :  { %v1283_v1 = vpop.permute.xlu1 %171  ;;  %v1285_v4 = vpop.permute.xlu0 %259 }
  0xc9   :  { %896 = vset.pattern.permute.xlu1 %v1583_v3 }
  0xca   :  { %415 = vperm.xlu1 %896, %v1107_v22  }
  0xcb   :  { %v1289_v5 = vpop.permute.xlu0 %334 }
  0xcc   :  { %v1291_v7 = vpop.permute.xlu1 %179 }
  0xce   :  { %897 = vset.pattern.permute.xlu1 %v1577_v2 }
  0xcf   :  { %421 = vperm.xlu1 %897, %v1107_v22   ;;  %v1295_v9 = vpop.permute.xlu0 %409 }
  0xd1   :  { %v1297_v10 = vpop.permute.xlu1 %190 }
  0xd3   :  { %898 = vset.pattern.permute.xlu1 %v1579_v11  ;;  %v1300_v13 = vpop.permute.xlu0 %484 }
  0xd4   :  { %434 = vperm.xlu1 %898, %v1161_v28  }
  0xd6   :  { %v1303_v20 = vpop.permute.xlu1 %196 }
  0xd7   :  { %v1308_v22 = vpop.permute.xlu0 %559 }
  0xd8   :  { %1594 = vst [vmem:[#allocation11_spill] sm:$0xff] %v1308_v22  ;;  %899 = vset.pattern.permute.xlu1 %v1583_v3  ;;  %v1597_v3 = vmov 1  }
  0xd9   :  { %440 = vperm.xlu1 %899, %v1161_v28   ;;  %v1328_v28 = vld [vmem:[%s1574_s1 + $0xe0] sm:$0xff] }
  0xda   :  { %746 = vperm.xlu0 %933, %v1328_v28  }
  0xdb   :  { %v1316_v2 = vpop.permute.xlu1 %209  ;;  %v1318_v11 = vpop.permute.xlu0 %634 }
  0xdc   :  { %1595 = vst [vmem:[#allocation12_spill] sm:$0xff] %v1318_v11  ;;  %v88_v11 = vadd.f32 %v87_v14, %v82_v38 }
  0xdd   :  { %900 = vset.pattern.permute.xlu1 %v1581_v6  ;;  %v112_v6 = vmul.f32 %v110_v62, %v1314_v8  ;;  %v162_v62 = vmul.f32 %v160_v63, %v1314_v8 }
  0xde   :  { %454 = vperm.xlu1 %900, %v1059_v15   ;;  %v93_v50 = vadd.f32 %v1220_v42, %v88_v11 }
  0xdf   :  { %v1332_v19 = vpop.permute.xlu0 %759  ;;  %v113_v43 = vadd.f32 %v112_v6, %v107_v55  ;;  %v163_v55 = vadd.f32 %v162_v62, %v157_v58 }
  0xe0   :  { %1596 = vst [vmem:[#allocation13_spill] sm:$0xff] %v1332_v19  ;;  %v1335_v21 = vpop.permute.xlu1 %215  ;;  %v1598_v19 = vmov 2   ;;  %v94_v42 = vmax.f32 %v93_v50, 0.0 }
  0xe1   :  { %938 = vset.pattern.permute.xlu0 %v1598_v19  ;;  %v118_v6 = vadd.f32 %v1255_v52, %v113_v43  ;;  %v168_v56 = vadd.f32 %v1226_v44, %v163_v55 }
  0xe2   :  { %901 = vset.pattern.permute.xlu1 %v1597_v3  ;;  %765 = vperm.xlu0 %938, %v1135_v26   ;;  %v1600_v26 = vmov 0  }
  0xe3   :  { %459 = vperm.xlu1 %901, %v1059_v15   ;;  %v119_v57 = vmax.f32 %v118_v6, 0.0 }
  0xe4   :  { %v30_v12 = vpop.permute.xlu0 %29 }
  0xe5   :  { %v32_v22 = vmul.f32 %v30_v12, %v1312_v27  ;;  %v1350_v14 = vpop.permute.xlu1 %229  ;;  %v124_v50 = vmul.f32 %v1261_v54, %v119_v57 }
  0xe7   :  { %v38_v38 = vadd.f32 %v37_v45, %v32_v22  ;;  %902 = vset.pattern.permute.xlu1 %v1599_v53  ;;  %v74_v45 = vmul.f32 %v1179_v32, %v69_v60  ;;  %v169_v32 = vmax.f32 %v168_v56, 0.0 }
  0xe8   :  { %v130_v40 = vpop.permute.xlu0 %129  ;;  %471 = vperm.xlu1 %902, %v1059_v15  }
  0xe9   :  { %v43_v63 = vadd.f32 %v1177_v31, %v38_v38  ;;  %v132_v12 = vmul.f32 %v130_v40, %v1312_v27  ;;  %v99_v31 = vmul.f32 %v1241_v48, %v94_v42  ;;  %v174_v38 = vmul.f32 %v1283_v1, %v169_v32 }
  0xea   :  { %v1361_v11 = vpop.permute.xlu1 %234 }
  0xeb   :  { %v44_v61 = vmax.f32 %v43_v63, 0.0  ;;  %v138_v22 = vadd.f32 %v137_v41, %v132_v12 }
  0xec   :  { %903 = vset.pattern.permute.xlu1 %v1600_v26  ;;  %v205_v60 = vpop.permute.xlu0 %204 }
  0xed   :  { %v49_v15 = vmul.f32 %v1192_v35, %v44_v61  ;;  %v143_v52 = vadd.f32 %v1273_v59, %v138_v22  ;;  %479 = vperm.xlu1 %903, %v1114_v23   ;;  %v187_v61 = vmul.f32 %v1279_v0, %v1314_v8  ;;  %v182_v22 = vmul.f32 %v1291_v7, %v1312_v27 }
  0xef   :  { %v75_v40 = vadd.f32 %v74_v45, %v49_v15  ;;  %v144_v43 = vmax.f32 %v143_v52, 0.0  ;;  %v1370_v62 = vpop.permute.xlu1 %246  ;;  %v188_v56 = vadd.f32 %v187_v61, %v182_v22  ;;  %v207_v15 = vmul.f32 %v205_v60, %v1312_v27 }
  0xf0   :  { %v280_v55 = vpop.permute.xlu0 %279 }
  0xf1   :  { %v100_v58 = vadd.f32 %v99_v31, %v75_v40  ;;  %904 = vset.pattern.permute.xlu1 %v1598_v19  ;;  %v149_v35 = vmul.f32 %v1189_v34, %v144_v43  ;;  %v193_v0 = vadd.f32 %v1297_v10, %v188_v56  ;;  %v262_v31 = vmul.f32 %v1285_v4, %v1314_v8 }
  0xf2   :  { %490 = vperm.xlu1 %904, %v1114_v23   ;;  %v237_v40 = vmul.f32 %v1361_v11, %v1314_v8 }
  0xf3   :  { %v125_v44 = vadd.f32 %v124_v50, %v100_v58  ;;  %v282_v58 = vmul.f32 %v280_v55, %v1312_v27 }
  0xf4   :  { %v255_v59 = vpop.permute.xlu1 %254  ;;  %v1387_v34 = vpop.permute.xlu0 %354 }
  0xf5   :  { %v150_v41 = vadd.f32 %v149_v35, %v125_v44  ;;  %v257_v50 = vmul.f32 %v255_v59, %v1312_v27  ;;  %v194_v44 = vmax.f32 %v193_v0, 0.0 }
  0xf6   :  { %905 = vset.pattern.permute.xlu1 %v1599_v53 }
  0xf7   :  { %v1378_v48 = vadd.f32 %v174_v38, %v150_v41  ;;  %496 = vperm.xlu1 %905, %v1114_v23   ;;  %v1394_v23 = vld [vmem:[%s1574_s1 + $0xf8] sm:$0xff]  ;;  %v263_v38 = vadd.f32 %v262_v31, %v257_v50  ;;  %v199_v61 = vmul.f32 %v1303_v20, %v194_v44 }
  0xf8   :  { %815 = vperm.xlu0 %938, %v1394_v23   ;;  %v1397_v12 = vpop.permute.xlu0 %429 }
  0xf9   :  { %v266_v54 = vpop.permute.xlu1 %265 }
  0xfa   :  { %v268_v56 = vadd.f32 %v266_v54, %v263_v38 }
  0xfb   :  { %906 = vset.pattern.permute.xlu1 %v1597_v3 }
  0xfc   :  { %509 = vperm.xlu1 %906, %v1168_v29   ;;  %941 = vset.pattern.permute.xlu0 %v1599_v53  ;;  %v1402_v42 = vpop.permute.xlu0 %504  ;;  %v269_v20 = vmax.f32 %v268_v56, 0.0 }
  0xfe   :  { %v1383_v6 = vpop.permute.xlu1 %271 }
  0xff   :  { %v274_v50 = vmul.f32 %v1383_v6, %v269_v20 }
 0x100   :  { %907 = vset.pattern.permute.xlu1 %v1598_v19  ;;  %v1411_v57 = vpop.permute.xlu0 %579 }
 0x101   :  { %515 = vperm.xlu1 %907, %v1168_v29  }
 0x103   :  { %v285_v1 = vpop.permute.xlu1 %284 }
 0x104   :  { %v1420_v7 = vpop.permute.xlu0 %654  ;;  %v287_v10 = vmul.f32 %v285_v1, %v1314_v8 }
 0x105   :  { %908 = vset.pattern.permute.xlu1 %v1600_v26 }
 0x106   :  { %529 = vperm.xlu1 %908, %v1065_v16   ;;  %v288_v41 = vadd.f32 %v287_v10, %v282_v58 }
 0x108   :  { %v291_v63 = vpop.permute.xlu1 %290  ;;  %v1435_v59 = vpop.permute.xlu0 %679 }
 0x10a   :  { %909 = vset.pattern.permute.xlu1 %v1597_v3 }
 0x10b   :  { %534 = vperm.xlu1 %909, %v1065_v16  }
 0x10d   :  { %v305_v29 = vpop.permute.xlu1 %304 }
 0x10e   :  { %v307_v60 = vmul.f32 %v305_v29, %v1312_v27  ;;  %v1446_v29 = vpop.permute.xlu0 %704 }
 0x10f   :  { %910 = vset.pattern.permute.xlu1 %v1599_v53 }
 0x110   :  { %546 = vperm.xlu1 %910, %v1065_v16   ;;  %v212_v16 = vmul.f32 %v1316_v2, %v1314_v8  ;;  %v232_v2 = vmul.f32 %v1350_v14, %v1312_v27  ;;  %v337_v14 = vmul.f32 %v1289_v5, %v1314_v8  ;;  %v293_v5 = vadd.f32 %v291_v63, %v288_v41 }
 0x112   :  { %v310_v45 = vpop.permute.xlu1 %309  ;;  %v213_v43 = vadd.f32 %v212_v16, %v207_v15  ;;  %v238_v35 = vadd.f32 %v237_v40, %v232_v2  ;;  %v294_v54 = vmax.f32 %v293_v5, 0.0  ;;  %v1457_v58 = vpop.permute.xlu0 %779 }
 0x113   :  { %v312_v11 = vmul.f32 %v310_v45, %v1314_v8 }
 0x114   :  { %911 = vset.pattern.permute.xlu1 %v1600_v26  ;;  %v218_v4 = vadd.f32 %v1335_v21, %v213_v43  ;;  %v243_v21 = vadd.f32 %v1233_v46, %v238_v35  ;;  %v299_v10 = vmul.f32 %v1207_v39, %v294_v54 }
 0x115   :  { %554 = vperm.xlu1 %911, %v1120_v24   ;;  %v313_v45 = vadd.f32 %v312_v11, %v307_v60 }
 0x116   :  { %v219_v22 = vmax.f32 %v218_v4, 0.0  ;;  %v244_v31 = vmax.f32 %v243_v21, 0.0  ;;  %v372_v11 = vpop.permute.xlu0 %371 }
 0x117   :  { %v322_v52 = vpop.permute.xlu1 %321  ;;  %v318_v40 = vadd.f32 %v1238_v47, %v313_v45 }
 0x118   :  { %v224_v0 = vmul.f32 %v1196_v36, %v219_v22  ;;  %v249_v63 = vmul.f32 %v1370_v62, %v244_v31 }
 0x119   :  { %912 = vset.pattern.permute.xlu1 %v1598_v19 }
 0x11a   :  { %565 = vperm.xlu1 %912, %v1120_v24  }
 0x11c   :  { %v330_v32 = vpop.permute.xlu1 %329 }
 0x11d   :  { %v332_v55 = vmul.f32 %v330_v32, %v1312_v27  ;;  %v319_v32 = vmax.f32 %v318_v40, 0.0 }
 0x11e   :  { %913 = vset.pattern.permute.xlu1 %v1599_v53 }
 0x11f   :  { %571 = vperm.xlu1 %913, %v1120_v24   ;;  %v200_v24 = vadd.f32 %v199_v61, %v1378_v48  ;;  %v338_v15 = vadd.f32 %v337_v14, %v332_v55  ;;  %v357_v48 = vmul.f32 %v1387_v34, %v1312_v27  ;;  %v324_v35 = vmul.f32 %v322_v52, %v319_v32 }
 0x121   :  { %v341_v1 = vpop.permute.xlu1 %340  ;;  %v225_v46 = vadd.f32 %v224_v0, %v200_v24 }
 0x122   :  { %v343_v43 = vadd.f32 %v341_v1, %v338_v15 }
 0x123   :  { %914 = vset.pattern.permute.xlu1 %v1597_v3  ;;  %v250_v47 = vadd.f32 %v249_v63, %v225_v46 }
 0x124   :  { %584 = vperm.xlu1 %914, %v1175_v30   ;;  %v344_v44 = vmax.f32 %v343_v43, 0.0  ;;  %v432_v43 = vmul.f32 %v1397_v12, %v1312_v27 }
 0x125   :  { %v275_v34 = vadd.f32 %v274_v50, %v250_v47 }
 0x126   :  { %v347_v16 = vpop.permute.xlu1 %346 }
 0x127   :  { %v300_v4 = vadd.f32 %v299_v10, %v275_v34  ;;  %v349_v6 = vmul.f32 %v347_v16, %v344_v44 }
 0x128   :  { %915 = vset.pattern.permute.xlu1 %v1598_v19 }
 0x129   :  { %590 = vperm.xlu1 %915, %v1175_v30   ;;  %v325_v14 = vadd.f32 %v324_v35, %v300_v4 }
 0x12b   :  { %v360_v36 = vpop.permute.xlu1 %359  ;;  %v350_v39 = vadd.f32 %v349_v6, %v325_v14  ;;  %v487_v6 = vmul.f32 %v1300_v13, %v1314_v8 }
 0x12c   :  { %v362_v2 = vmul.f32 %v360_v36, %v1314_v8  ;;  %v447_v36 = vpop.permute.xlu0 %446 }
 0x12d   :  { %916 = vset.pattern.permute.xlu1 %v1600_v26 }
 0x12e   :  { %604 = vperm.xlu1 %916, %v1072_v17   ;;  %v363_v30 = vadd.f32 %v362_v2, %v357_v48 }
 0x130   :  { %v366_v62 = vpop.permute.xlu1 %365 }
 0x131   :  { %v368_v38 = vadd.f32 %v366_v62, %v363_v30 }
 0x132   :  { %917 = vset.pattern.permute.xlu1 %v1597_v3 }
 0x133   :  { %v369_v41 = vmax.f32 %v368_v38, 0.0  ;;  %609 = vperm.xlu1 %917, %v1072_v17  }
 0x135   :  { %v374_v60 = vmul.f32 %v372_v11, %v369_v41  ;;  %v380_v55 = vpop.permute.xlu1 %379 }
 0x136   :  { %v382_v61 = vmul.f32 %v380_v55, %v1312_v27 }
 0x137   :  { %v375_v1 = vadd.f32 %v374_v60, %v350_v39  ;;  %918 = vset.pattern.permute.xlu1 %v1599_v53  ;;  %v1601_v39 = vld [vmem:[#allocation6_spill] sm:$0xff] }
 0x138   :  { %621 = vperm.xlu1 %918, %v1072_v17   ;;  %v412_v17 = vmul.f32 %v1295_v9, %v1314_v8 }
 0x13a   :  { %v385_v52 = vpop.permute.xlu1 %384 }
 0x13b   :  { %v387_v22 = vmul.f32 %v385_v52, %v1314_v8 }
 0x13c   :  { %919 = vset.pattern.permute.xlu1 %v1600_v26 }
 0x13d   :  { %v388_v21 = vadd.f32 %v387_v22, %v382_v61  ;;  %629 = vperm.xlu1 %919, %v1127_v25   ;;  %v507_v22 = vmul.f32 %v1402_v42, %v1312_v27 }
 0x13f   :  { %v397_v56 = vpop.permute.xlu1 %396  ;;  %v393_v45 = vadd.f32 %v1245_v49, %v388_v21 }
 0x141   :  { %v394_v24 = vmax.f32 %v393_v45, 0.0  ;;  %920 = vset.pattern.permute.xlu1 %v1598_v19  ;;  %v1602_v45 = vld [vmem:[#allocation7_spill] sm:$0xff] }
 0x142   :  { %640 = vperm.xlu1 %920, %v1127_v25  }
 0x143   :  { %v399_v5 = vmul.f32 %v397_v56, %v394_v24 }
 0x144   :  { %v405_v15 = vpop.permute.xlu1 %404 }
 0x145   :  { %v400_v16 = vadd.f32 %v399_v5, %v375_v1  ;;  %v407_v0 = vmul.f32 %v405_v15, %v1312_v27  ;;  %v522_v5 = vpop.permute.xlu0 %521 }
 0x146   :  { %921 = vset.pattern.permute.xlu1 %v1599_v53 }
 0x147   :  { %646 = vperm.xlu1 %921, %v1127_v25   ;;  %v413_v31 = vadd.f32 %v412_v17, %v407_v0 }
 0x149   :  { %v416_v20 = vpop.permute.xlu1 %415 }
 0x14a   :  { %v418_v49 = vadd.f32 %v416_v20, %v413_v31 }
 0x14b   :  { %922 = vset.pattern.permute.xlu1 %v1597_v3 }
 0x14c   :  { %v419_v40 = vmax.f32 %v418_v49, 0.0  ;;  %659 = vperm.xlu1 %922, %v1185_v33  }
 0x14e   :  { %v422_v46 = vpop.permute.xlu1 %421 }
 0x14f   :  { %v424_v54 = vmul.f32 %v422_v46, %v419_v40  ;;  %v1603_v40 = vld [vmem:[#allocation8_spill] sm:$0xff] }
 0x150   :  { %923 = vset.pattern.permute.xlu1 %v1598_v19 }
 0x151   :  { %v425_v9 = vadd.f32 %v424_v54, %v400_v16  ;;  %665 = vperm.xlu1 %923, %v1185_v33  }
 0x153   :  { %v435_v48 = vpop.permute.xlu1 %434 }
 0x154   :  { %v437_v25 = vmul.f32 %v435_v48, %v1314_v8 }
 0x155   :  { %924 = vset.pattern.permute.xlu1 %v1597_v3 }
 0x156   :  { %684 = vperm.xlu1 %924, %v1079_v18   ;;  %v438_v63 = vadd.f32 %v437_v25, %v432_v43 }
 0x158   :  { %v441_v50 = vpop.permute.xlu1 %440 }
 0x159   :  { %v443_v32 = vadd.f32 %v441_v50, %v438_v63 }
 0x15a   :  { %709 = vperm.xlu1 %924, %v1202_v37  }
 0x15b   :  { %v444_v2 = vmax.f32 %v443_v32, 0.0 }
 0x15d   :  { %v449_v47 = vmul.f32 %v447_v36, %v444_v2  ;;  %v455_v10 = vpop.permute.xlu1 %454 }
 0x15e   :  { %926 = vset.pattern.permute.xlu1 %v1600_v26  ;;  %v457_v44 = vmul.f32 %v455_v10, %v1312_v27  ;;  %v582_v10 = vmul.f32 %v1411_v57, %v1312_v27 }
 0x15f   :  { %v450_v33 = vadd.f32 %v449_v47, %v425_v9  ;;  %729 = vperm.xlu1 %926, %v1328_v28  }
 0x162   :  { %v460_v12 = vpop.permute.xlu1 %459 }
 0x163   :  { %v462_v30 = vmul.f32 %v460_v12, %v1314_v8  ;;  %927 = vset.pattern.permute.xlu1 %v1597_v3 }
 0x164   :  { %734 = vperm.xlu1 %927, %v1328_v28  }
 0x165   :  { %v463_v34 = vadd.f32 %v462_v30, %v457_v44 }
 0x167   :  { %v472_v35 = vpop.permute.xlu1 %471  ;;  %v468_v62 = vadd.f32 %v1251_v51, %v463_v34  ;;  %v597_v34 = vpop.permute.xlu0 %596 }
 0x168   :  { %928 = vset.pattern.permute.xlu1 %v1598_v19 }
 0x169   :  { %v469_v4 = vmax.f32 %v468_v62, 0.0  ;;  %715 = vperm.xlu1 %928, %v1202_v37  }
 0x16b   :  { %v474_v38 = vmul.f32 %v472_v35, %v469_v4 }
 0x16c   :  { %v480_v11 = vpop.permute.xlu1 %479 }
 0x16d   :  { %v475_v14 = vadd.f32 %v474_v38, %v450_v33  ;;  %v482_v41 = vmul.f32 %v480_v11, %v1312_v27  ;;  %929 = vset.pattern.permute.xlu1 %v1600_v26 }
 0x16e   :  { %754 = vperm.xlu1 %929, %v1601_v39  }
 0x16f   :  { %v488_v60 = vadd.f32 %v487_v6, %v482_v41 }
 0x171   :  { %v491_v55 = vpop.permute.xlu1 %490 }
 0x172   :  { %v493_v51 = vadd.f32 %v491_v55, %v488_v60  ;;  %931 = vset.pattern.permute.xlu1 %v1599_v53 }
 0x173   :  { %696 = vperm.xlu1 %931, %v1079_v18  }
 0x174   :  { %v494_v1 = vmax.f32 %v493_v51, 0.0 }
 0x176   :  { %v497_v52 = vpop.permute.xlu1 %496 }
 0x177   :  { %v499_v61 = vmul.f32 %v497_v52, %v494_v1  ;;  %932 = vset.pattern.permute.xlu1 %v1598_v19  ;;  %v1606_v1 = vld [vmem:[#allocation12_spill] sm:$0xff] }
 0x178   :  { %740 = vperm.xlu1 %932, %v1328_v28   ;;  %v637_v52 = vmul.f32 %v1606_v1, %v1314_v8 }
 0x179   :  { %v500_v13 = vadd.f32 %v499_v61, %v475_v14 }
 0x17b   :  { %v510_v21 = vpop.permute.xlu1 %509 }
 0x17c   :  { %v512_v56 = vmul.f32 %v510_v21, %v1314_v8  ;;  %934 = vset.pattern.permute.xlu1 %v1597_v3 }
 0x17d   :  { %784 = vperm.xlu1 %934, %v1602_v45  }
 0x17e   :  { %v513_v24 = vadd.f32 %v512_v56, %v507_v22 }
 0x180   :  { %v516_v18 = vpop.permute.xlu1 %515 }
 0x181   :  { %v518_v17 = vadd.f32 %v516_v18, %v513_v24  ;;  %935 = vset.pattern.permute.xlu1 %v1599_v53 }
 0x182   :  { %721 = vperm.xlu1 %935, %v1202_v37  }
 0x183   :  { %v519_v28 = vmax.f32 %v518_v17, 0.0 }
 0x185   :  { %v524_v15 = vmul.f32 %v522_v5, %v519_v28  ;;  %v530_v16 = vpop.permute.xlu1 %529 }
 0x186   :  { %936 = vset.pattern.permute.xlu1 %v1600_v26  ;;  %v532_v31 = vmul.f32 %v530_v16, %v1312_v27  ;;  %v1604_v26 = vld [vmem:[#allocation11_spill] sm:$0xff] }
 0x187   :  { %v525_v42 = vadd.f32 %v524_v15, %v500_v13  ;;  %804 = vperm.xlu1 %936, %v1394_v23   ;;  %v562_v9 = vmul.f32 %v1604_v26, %v1314_v8 }
 0x18a   :  { %v535_v0 = vpop.permute.xlu1 %534 }
 0x18b   :  { %v537_v20 = vmul.f32 %v535_v0, %v1314_v8  ;;  %937 = vset.pattern.permute.xlu1 %v1597_v3 }
 0x18c   :  { %809 = vperm.xlu1 %937, %v1394_v23  }
 0x18d   :  { %v538_v49 = vadd.f32 %v537_v20, %v532_v31 }
 0x18f   :  { %v547_v37 = vpop.permute.xlu1 %546  ;;  %v543_v46 = vadd.f32 %v1603_v40, %v538_v49 }
 0x190   :  { %939 = vset.pattern.permute.xlu1 %v1598_v19 }
 0x191   :  { %v544_v54 = vmax.f32 %v543_v46, 0.0  ;;  %790 = vperm.xlu1 %939, %v1602_v45   ;;  %v657_v46 = vmul.f32 %v1420_v7, %v1312_v27 }
 0x193   :  { %v549_v43 = vmul.f32 %v547_v37, %v544_v54 }
 0x194   :  { %v555_v48 = vpop.permute.xlu1 %554 }
 0x195   :  { %v550_v25 = vadd.f32 %v549_v43, %v525_v42  ;;  %v557_v63 = vmul.f32 %v555_v48, %v1312_v27  ;;  %940 = vset.pattern.permute.xlu1 %v1599_v53  ;;  %v682_v43 = vmul.f32 %v1435_v59, %v1312_v27 }
 0x196   :  { %771 = vperm.xlu1 %940, %v1601_v39   ;;  %v1605_v39 = vld [vmem:[#allocation9_spill] sm:$0xff] }
 0x197   :  { %v563_v3 = vadd.f32 %v562_v9, %v557_v63 }
 0x199   :  { %v566_v50 = vpop.permute.xlu1 %565 }
 0x19a   :  { %v568_v32 = vadd.f32 %v566_v50, %v563_v3  ;;  %796 = vperm.xlu1 %940, %v1602_v45   ;;  %v672_v50 = vpop.permute.xlu0 %671 }
 0x19c   :  { %v569_v19 = vmax.f32 %v568_v32, 0.0  ;;  %v707_v32 = vmul.f32 %v1446_v29, %v1312_v27 }
 0x19e   :  { %821 = vperm.xlu1 %940, %v1394_v23   ;;  %v572_v36 = vpop.permute.xlu1 %571 }
 0x19f   :  { %v574_v2 = vmul.f32 %v572_v36, %v569_v19 }
 0x1a1   :  { %v575_v47 = vadd.f32 %v574_v2, %v550_v25  ;;  %v1607_v2 = vld [vmem:[#allocation10_spill] sm:$0xff] }
 0x1a3   :  { %v585_v33 = vpop.permute.xlu1 %584 }
 0x1a4   :  { %v587_v12 = vmul.f32 %v585_v33, %v1314_v8  ;;  %v747_v33 = vpop.permute.xlu0 %746 }
 0x1a6   :  { %v588_v53 = vadd.f32 %v587_v12, %v582_v10 }
 0x1a8   :  { %v591_v44 = vpop.permute.xlu1 %590 }
 0x1a9   :  { %v593_v30 = vadd.f32 %v591_v44, %v588_v53  ;;  %v1608_v44 = vld [vmem:[#allocation13_spill] sm:$0xff] }
 0x1ab   :  { %v594_v35 = vmax.f32 %v593_v30, 0.0  ;;  %v762_v30 = vmul.f32 %v1608_v44, %v1314_v8 }
 0x1ad   :  { %v599_v62 = vmul.f32 %v597_v34, %v594_v35  ;;  %v605_v4 = vpop.permute.xlu1 %604 }
 0x1ae   :  { %v607_v23 = vmul.f32 %v605_v4, %v1312_v27 }
 0x1af   :  { %v600_v6 = vadd.f32 %v599_v62, %v575_v47 }
 0x1b2   :  { %v610_v38 = vpop.permute.xlu1 %609 }
 0x1b3   :  { %v612_v11 = vmul.f32 %v610_v38, %v1314_v8 }
 0x1b5   :  { %v613_v14 = vadd.f32 %v612_v11, %v607_v23  ;;  %v766_v11 = vpop.permute.xlu0 %765 }
 0x1b7   :  { %v622_v41 = vpop.permute.xlu1 %621  ;;  %v618_v57 = vadd.f32 %v1605_v39, %v613_v14 }
 0x1b9   :  { %v619_v60 = vmax.f32 %v618_v57, 0.0  ;;  %v782_v57 = vmul.f32 %v1457_v58, %v1312_v27 }
 0x1bb   :  { %v624_v55 = vmul.f32 %v622_v41, %v619_v60 }
 0x1bc   :  { %v630_v51 = vpop.permute.xlu1 %629 }
 0x1bd   :  { %v625_v61 = vadd.f32 %v624_v55, %v600_v6  ;;  %v632_v13 = vmul.f32 %v630_v51, %v1312_v27 }
 0x1bf   :  { %v638_v22 = vadd.f32 %v637_v52, %v632_v13 }
 0x1c1   :  { %v641_v21 = vpop.permute.xlu1 %640 }
 0x1c2   :  { %v643_v56 = vadd.f32 %v641_v21, %v638_v22 }
 0x1c4   :  { %v644_v45 = vmax.f32 %v643_v56, 0.0 }
 0x1c6   :  { %v647_v24 = vpop.permute.xlu1 %646 }
 0x1c7   :  { %v649_v18 = vmul.f32 %v647_v24, %v644_v45 }
 0x1c9   :  { %v650_v17 = vadd.f32 %v649_v18, %v625_v61  ;;  %v816_v18 = vpop.permute.xlu0 %815 }
 0x1cb   :  { %v660_v5 = vpop.permute.xlu1 %659 }
 0x1cc   :  { %v662_v40 = vmul.f32 %v660_v5, %v1314_v8 }
 0x1ce   :  { %v663_v26 = vadd.f32 %v662_v40, %v657_v46 }
 0x1d0   :  { %v666_v28 = vpop.permute.xlu1 %665 }
 0x1d1   :  { %v668_v25 = vadd.f32 %v666_v28, %v663_v26 }
 0x1d3   :  { %v669_v19 = vmax.f32 %v668_v25, 0.0 }
 0x1d5   :  { %v685_v15 = vpop.permute.xlu1 %684  ;;  %v674_v34 = vmul.f32 %v672_v50, %v669_v19 }
 0x1d6   :  { %v687_v9 = vmul.f32 %v685_v15, %v1314_v8 }
 0x1d7   :  { %v675_v14 = vadd.f32 %v674_v34, %v650_v17 }
 0x1d8   :  { %v688_v63 = vadd.f32 %v687_v9, %v682_v43  ;;  %v832_v9 = vstv %s1575_s2 }
 0x1d9   :  { %v710_v16 = vpop.permute.xlu1 %709 }
 0x1da   :  { %v712_v3 = vmul.f32 %v710_v16, %v1314_v8  ;;  %v693_v47 = vadd.f32 %v1607_v2, %v688_v63 }
 0x1dc   :  { %v713_v7 = vadd.f32 %v712_v3, %v707_v32  ;;  %v694_v35 = vmax.f32 %v693_v47, 0.0 }
 0x1de   :  { %v730_v42 = vpop.permute.xlu1 %729 }
 0x1df   :  { %v732_v12 = vmul.f32 %v730_v42, %v1312_v27 }
 0x1e3   :  { %v735_v0 = vpop.permute.xlu1 %734 }
 0x1e4   :  { %v737_v36 = vmul.f32 %v735_v0, %v1314_v8 }
 0x1e6   :  { %v738_v62 = vadd.f32 %v737_v36, %v732_v12 }
 0x1e8   :  { %v716_v31 = vpop.permute.xlu1 %715 }
 0x1e9   :  { %v718_v59 = vadd.f32 %v716_v31, %v713_v7 }
 0x1eb   :  { %v719_v4 = vmax.f32 %v718_v59, 0.0 }
 0x1ed   :  { %v755_v20 = vpop.permute.xlu1 %754 }
 0x1ee   :  { %v757_v53 = vmul.f32 %v755_v20, %v1312_v27 }
 0x1f0   :  { %v763_v6 = vadd.f32 %v762_v30, %v757_v53 }
 0x1f2   :  { %v697_v49 = vpop.permute.xlu1 %696  ;;  %v768_v60 = vadd.f32 %v766_v11, %v763_v6 }
 0x1f3   :  { %v699_v38 = vmul.f32 %v697_v49, %v694_v35 }
 0x1f4   :  { %v769_v21 = vmax.f32 %v768_v60, 0.0 }
 0x1f5   :  { %v700_v55 = vadd.f32 %v699_v38, %v675_v14 }
 0x1f7   :  { %v741_v37 = vpop.permute.xlu1 %740 }
 0x1f8   :  { %v743_v23 = vadd.f32 %v741_v37, %v738_v62 }
 0x1fa   :  { %v744_v51 = vmax.f32 %v743_v23, 0.0 }
 0x1fc   :  { %v785_v54 = vpop.permute.xlu1 %784  ;;  %v749_v56 = vmul.f32 %v747_v33, %v744_v51 }
 0x1fd   :  { %v787_v41 = vmul.f32 %v785_v54, %v1314_v8 }
 0x1ff   :  { %v788_v22 = vadd.f32 %v787_v41, %v782_v57 }
 0x201   :  { %v722_v48 = vpop.permute.xlu1 %721 }
 0x202   :  { %v724_v39 = vmul.f32 %v722_v48, %v719_v4 }
 0x204   :  { %v725_v61 = vadd.f32 %v724_v39, %v700_v55 }
 0x206   :  { %v805_v10 = vpop.permute.xlu1 %804  ;;  %v750_v5 = vadd.f32 %v749_v56, %v725_v61 }
 0x207   :  { %v807_v13 = vmul.f32 %v805_v10, %v1312_v27 }
 0x20b   :  { %v810_v29 = vpop.permute.xlu1 %809 }
 0x20c   :  { %v812_v1 = vmul.f32 %v810_v29, %v1314_v8 }
 0x20e   :  { %v813_v45 = vadd.f32 %v812_v1, %v807_v13 }
 0x210   :  { %v791_v52 = vpop.permute.xlu1 %790  ;;  %v818_v15 = vadd.f32 %v816_v18, %v813_v45 }
 0x211   :  { %v793_v24 = vadd.f32 %v791_v52, %v788_v22 }
 0x212   :  { %v819_v31 = vmax.f32 %v818_v15, 0.0 }
 0x213   :  { %v794_v58 = vmax.f32 %v793_v24, 0.0 }
 0x215   :  { %v772_v17 = vpop.permute.xlu1 %771 }
 0x216   :  { %v774_v28 = vmul.f32 %v772_v17, %v769_v21 }
 0x218   :  { %v775_v16 = vadd.f32 %v774_v28, %v750_v5 }
 0x219   :  { %v797_v42 = vpop.permute.xlu1 %796 }
 0x21a   :  { %v799_v0 = vmul.f32 %v797_v42, %v794_v58 }
 0x21c   :  { %v800_v20 = vadd.f32 %v799_v0, %v775_v16 }
 0x21d   :  { %v822_v8 = vpop.permute.xlu1 %821 }
 0x21e   :  { %v824_v49 = vmul.f32 %v822_v8, %v819_v31 }
 0x220   :  { %v825_v37 = vadd.f32 %v824_v49, %v800_v20 }
 0x222   :  { %v826_v27 = vrot.slane %v825_v37, 4 }
 0x224   :  { %v827_v40 = vadd.f32 %v826_v27, %v825_v37 }
 0x226   :  { %v828_v46 = vrot.slane %v827_v40, 2 }
 0x228   :  { %v829_v54 = vadd.f32 %v828_v46, %v827_v40 }
 0x22a   :  { %v830_v26 = vrot.slane %v829_v54, 1 }
 0x22c   :  { %v831_v43 = vadd.f32 %v830_v26, %v829_v54 }
 0x22e   :  { %v833_v48 = vadd.f32 %v832_v9, %v831_v43 }
 0x230   :  { %834 = vst [vmem:[#allocation3] sm:$0x1] %v833_v48 }
 0x231   :  { %953 = shalt.err (!%p950_p4)
}
 0x232   :  { %s954_s30 = scalar_lea.hbm %s1576_s3, 16 }
 0x233   :  { %p955_p5 = scmp.ne.s32.totalorder %s1576_s3, %s954_s30  ;;  %p958_p6 = scmp.lt.u32.totalorder %s954_s30, %s1576_s3 }
 0x235   :  { %p960_p7 = pnand %p958_p6, %p955_p5 }
 0x237   :  { %963 = shalt.err (!%p960_p7)
}
 0x238   :  { %844 = dma.vmem_to_hbm [thread:$0]  %s842_s25, 16, %s1576_s3, [#allocation4]  }
 0x239   :  { %964 = dma.done.wait [#allocation4], 16  }
 0x23a   :  { %965 = vsyncadd [#allocation4], 4294967280 }
 0x23b   :  { %848 = vsyncpa [#allocation4], 1 }

</bundles_post_ra>
